<compile_context>
chip_gen: v7x
topology: tpu7x:2x2x1
jax: 0.10.0
libtpu: 0.0.40
codegen_flags: <defaults>
</compile_context>

<pallas_src>
import functools

import jax
import jax.numpy as jnp
from jax import lax
from jax.experimental import pallas as pl
from jax.experimental.pallas import tpu as pltpu

LANE = 128
SUB = 8
NEG_INF = -1e30


def _round_up(v, m):
    return (v + m - 1) // m * m


def _pad2(a, rows, cols, dtype):
    r, c = a.shape
    return jnp.zeros((rows, cols), dtype).at[:r, :c].set(a.astype(dtype))


def pack_params(params, node_features_dim, hidden_dim, num_classes):
    """One-time packing of all parameters into two lane-dense slabs (hoisted from the
    per-call path).

    w_slab: (4*128, 128) bf16 -- rows [0:128) w1_aug, [128:256) w2_aug,
            [256:384) fc1_w, [384:512) fc2_w, where
            w*_aug = [w | w @ a_dst^T | w @ a_src^T]  (fused attention-score projection;
            the two extra columns land at indices H and H+1 and are killed downstream by
            the zero-padded rows of the next weight tile).
    b_slab: (8, 128) f32 -- rows 0..3 = b1, b2, fc1_b, fc2_b.
    """
    assert node_features_dim <= LANE
    assert hidden_dim + 2 <= LANE
    assert num_classes <= LANE

    def aug(w, a_src, a_dst):
        return jnp.concatenate(
            [w, w @ a_dst.reshape(-1, 1), w @ a_src.reshape(-1, 1)], axis=1)

    w_tiles = [
        _pad2(aug(params["w1"], params["att_src1"], params["att_dst1"]),
              LANE, LANE, jnp.bfloat16),
        _pad2(aug(params["w2"], params["att_src2"], params["att_dst2"]),
              LANE, LANE, jnp.bfloat16),
        _pad2(params["fc1_w"], LANE, LANE, jnp.bfloat16),
        _pad2(params["fc2_w"], LANE, LANE, jnp.bfloat16),
    ]
    w_slab = jnp.concatenate(w_tiles, axis=0)                      # (512, 128) bf16

    b_rows = jnp.concatenate([
        _pad2(params["b1"], 1, LANE, jnp.float32),
        _pad2(params["b2"], 1, LANE, jnp.float32),
        _pad2(params["fc1_b"], 1, LANE, jnp.float32),
        _pad2(params["fc2_b"], 1, LANE, jnp.float32),
    ], axis=0)
    b_slab = jnp.zeros((SUB, LANE), jnp.float32).at[:4].set(b_rows)  # (8, 128) f32
    return w_slab, b_slab


def gnn_kernel(hidden_dim, num_classes, softmax_bf16,
               x_ref, adjb_ref, pool_ref, w_ref, b_ref, out_ref):
    adj_bias = adjb_ref[...]                            # (Np, Np) f32 additive mask

    def gat_layer(h_in_bf, tile):
        """Dense single-head GATConv (PyG semantics, negative_slope=0.2)."""
        w_aug = w_ref[tile * LANE:(tile + 1) * LANE, :]            # (128,128) bf16
        bias = b_ref[tile:tile + 1, :]                             # (1,128) f32

        # One projection matmul yields h (cols 0..H-1), dst score (col H), src score
        # (col H+1).  Extra columns are harmless: the next layer's weight tile has zero
        # rows there.
        h_aug = jnp.dot(h_in_bf, w_aug, preferred_element_type=jnp.float32)  # (Np,128)
        s_dst = h_aug[:, hidden_dim:hidden_dim + 1]                          # (Np, 1)
        # Tile-aligned 128x128 f32 transpose (XLU) -> src score as a lane-dense row.
        s_src = jnp.transpose(h_aug)[hidden_dim + 1:hidden_dim + 2, :]       # (1, Np)
        h_aug_bf = h_aug.astype(jnp.bfloat16)

        e = s_dst + s_src                                                    # (Np, Np)
        e = jnp.where(e > 0.0, e, 0.2 * e) + adj_bias    # LeakyReLU(0.2) + additive mask

        z = e - jnp.max(e, axis=-1, keepdims=True)
        p = jnp.exp(z)                                                       # f32 EUP
        if softmax_bf16:
            p = p.astype(jnp.bfloat16)                   # v6e/v7x: halve vreg footprint
        denom = jnp.sum(p.astype(jnp.float32), axis=-1, keepdims=True)       # f32 >= 1
        inv = pl.reciprocal(denom, approx=True)                              # EUP vrcp
        alpha = (p * inv.astype(p.dtype)).astype(jnp.bfloat16)

        return jnp.dot(alpha, h_aug_bf, preferred_element_type=jnp.float32) + bias

    # x = relu(conv1(x, edge_index)); x = relu(conv2(x, edge_index))
    h1 = jnp.maximum(gat_layer(x_ref[...], 0), 0.0)
    h2 = jnp.maximum(gat_layer(h1.astype(jnp.bfloat16), 1), 0.0)

    # x = global_add_pool(x, batch)  (one-hot pooling matmul; padded rows zeroed by pool)
    g = jnp.dot(pool_ref[...], h2.astype(jnp.bfloat16),
                preferred_element_type=jnp.float32)                          # (Gp, 128)

    # x = relu(fc1(x))
    g = jnp.maximum(
        jnp.dot(g.astype(jnp.bfloat16), w_ref[2 * LANE:3 * LANE, :],
                preferred_element_type=jnp.float32) + b_ref[2:3, :], 0.0)

    # x = dropout(x, p=0.5, training=False) -> identity (inference semantics)

    # x = fc2(x)
    logits = jnp.dot(g.astype(jnp.bfloat16), w_ref[3 * LANE:4 * LANE, :],
                     preferred_element_type=jnp.float32) + b_ref[3:4, :]     # (Gp, 128)

    # Mask padded class lanes so they do not participate in the softmax.
    class_ids = lax.broadcasted_iota(jnp.int32, logits.shape, 1)
    logits = jnp.where(class_ids < num_classes, logits, NEG_INF)

    # readout = LogSoftmax(dim=-1)
    mx = jnp.max(logits, axis=-1, keepdims=True)
    zz = logits - mx
    lse = jnp.log(jnp.sum(jnp.exp(zz), axis=-1, keepdims=True))
    out_ref[...] = zz - lse


@functools.partial(jax.jit,
                   static_argnames=("hidden_dim", "num_classes", "softmax_bf16"))
def gnn_graph_forward(x, adj, pool, w_slab, b_slab, *,
                      hidden_dim, num_classes, softmax_bf16):
    N, _ = x.shape
    G, _ = pool.shape
    Np = _round_up(N, LANE)
    Gp = _round_up(G, SUB)

    # Per-call padding only for the graph-dependent tensors (params already packed).
    x_p = _pad2(x, Np, LANE, jnp.bfloat16)
    adj_p = _pad2(adj, Np, Np, jnp.float32)
    adj_bias = jnp.where(adj_p > 0, 0.0, NEG_INF).astype(jnp.float32)
    pool_p = _pad2(pool, Gp, Np, jnp.bfloat16)

    inputs = [x_p, adj_bias, pool_p, w_slab, b_slab]

    def full_spec(a):
        nd = a.ndim
        return pl.BlockSpec(a.shape, lambda _nd=nd: (0,) * _nd)

    out_p = pl.pallas_call(
        functools.partial(gnn_kernel, hidden_dim, num_classes, softmax_bf16),
        out_shape=jax.ShapeDtypeStruct((Gp, LANE), jnp.float32),
        grid=(),
        in_specs=[full_spec(a) for a in inputs],
        out_specs=pl.BlockSpec((Gp, LANE), lambda: (0, 0)),
        compiler_params=pltpu.CompilerParams(vmem_limit_bytes=32 << 20),
    )(*inputs)

    return out_p[:G, :num_classes]


def _use_bf16_softmax():
    """bf16 softmax intermediates only on generations with native bf16 VPU (v6e/v7x)."""
    try:
        kind = jax.devices()[0].device_kind.lower()
    except Exception:
        return False
    return ("v6" in kind) or ("v7" in kind) or ("7x" in kind)


def gnn_reference(x, adj, pool, params):
    """Pure-JAX f32 reference with identical semantics (for validation)."""
    def gat(h, w, a_src, a_dst, b):
        hh = h @ w
        s_dst = hh @ a_dst.reshape(-1, 1)            # (N, 1)
        s_src = (hh @ a_src.reshape(-1, 1)).T        # (1, N)
        e = s_dst + s_src
        e = jnp.where(e > 0, e, 0.2 * e)
        e = jnp.where(adj > 0, e, -1e30)
        p = jnp.exp(e - e.max(-1, keepdims=True))
        p = jnp.where(adj > 0, p, 0.0)
        alpha = p / p.sum(-1, keepdims=True)
        return alpha @ hh + b

    h1 = jax.nn.relu(gat(x, params["w1"], params["att_src1"], params["att_dst1"], params["b1"]))
    h2 = jax.nn.relu(gat(h1, params["w2"], params["att_src2"], params["att_dst2"], params["b2"]))
    g = pool @ h2
    g = jax.nn.relu(g @ params["fc1_w"] + params["fc1_b"])
    logits = g @ params["fc2_w"] + params["fc2_b"]
    return jax.nn.log_softmax(logits, axis=-1)


def init_params(key, node_features_dim, hidden_dim, num_classes):
    ks = jax.random.split(key, 8)
    s = 0.1
    return {
        # GATConv 1 (attention vectors stored as lane-dense (1, H) rows)
        "w1":       s * jax.random.normal(ks[0], (node_features_dim, hidden_dim), jnp.float32),
        "att_src1": s * jax.random.normal(ks[1], (1, hidden_dim), jnp.float32),
        "att_dst1": s * jax.random.normal(ks[2], (1, hidden_dim), jnp.float32),
        "b1":       jnp.zeros((1, hidden_dim), jnp.float32),
        # GATConv 2
        "w2":       s * jax.random.normal(ks[3], (hidden_dim, hidden_dim), jnp.float32),
        "att_src2": s * jax.random.normal(ks[4], (1, hidden_dim), jnp.float32),
        "att_dst2": s * jax.random.normal(ks[5], (1, hidden_dim), jnp.float32),
        "b2":       jnp.zeros((1, hidden_dim), jnp.float32),
        # MLP head
        "fc1_w":    s * jax.random.normal(ks[6], (hidden_dim, hidden_dim), jnp.float32),
        "fc1_b":    jnp.zeros((1, hidden_dim), jnp.float32),
        "fc2_w":    s * jax.random.normal(ks[7], (hidden_dim, num_classes), jnp.float32),
        "fc2_b":    jnp.zeros((1, num_classes), jnp.float32),
    }


if __name__ == "__main__":
    key = jax.random.PRNGKey(0)
    k_x, k_src, k_dst, k_p = jax.random.split(key, 4)

    # Small MUTAG-like problem: 4 graphs x 8 nodes, 7 node features, hidden 32, 2 classes.
    N, F_IN, HIDDEN, C, G, E = 32, 7, 32, 2, 4, 64

    x = jax.random.normal(k_x, (N, F_IN), jnp.float32)

    # edge_index: (2, E) with row 0 = source, row 1 = target (PyG convention).
    src = jax.random.randint(k_src, (E,), 0, N)
    dst = jax.random.randint(k_dst, (E,), 0, N)

    # Dense adjacency mask A[target, source] = 1, plus self loops (GATConv add_self_loops=True).
    adj = jnp.zeros((N, N), jnp.float32).at[dst, src].set(1.0)
    adj = jnp.maximum(adj, jnp.eye(N, dtype=jnp.float32))

    # batch assignment: 8 nodes per graph -> one-hot pooling matrix (G, N) for global_add_pool.
    batch = jnp.repeat(jnp.arange(G, dtype=jnp.int32), N // G)
    pool = (batch[None, :] == jnp.arange(G, dtype=jnp.int32)[:, None]).astype(jnp.float32)

    params = init_params(k_p, F_IN, HIDDEN, C)

    # One-time parameter packing (hoisted out of the per-call path).
    w_slab, b_slab = pack_params(params, F_IN, HIDDEN, C)
    softmax_bf16 = _use_bf16_softmax()

    out = gnn_graph_forward(x, adj, pool, w_slab, b_slab,
                            hidden_dim=HIDDEN, num_classes=C,
                            softmax_bf16=softmax_bf16)
    out = jax.block_until_ready(out)

    assert out.shape == (G, C)
    # log-softmax rows must sum (in prob space) to ~1
    assert bool(jnp.all(jnp.abs(jnp.sum(jnp.exp(out), axis=-1) - 1.0) < 1e-4))
    # validate against f32 pure-JAX reference (kernel uses bf16 MXU inputs, f32 accumulate)
    ref = gnn_reference(x, adj, pool, params)
    assert bool(jnp.all(jnp.abs(out - ref) < 0.1)), (out, ref)
    print("KERNEL_OK")
</pallas_src>

<mosaic_0001>
module attributes {stable_mosaic.version = 11 : i64} {
  func.func @gnn_kernel(%arg0: memref<128x128xbf16, #tpu.memory_space<vmem>>, %arg1: memref<128x128xf32, #tpu.memory_space<vmem>>, %arg2: memref<8x128xbf16, #tpu.memory_space<vmem>>, %arg3: memref<512x128xbf16, #tpu.memory_space<vmem>>, %arg4: memref<8x128xf32, #tpu.memory_space<vmem>>, %arg5: memref<8x128xf32, #tpu.memory_space<vmem>>) attributes {dimension_semantics = [], scalar_prefetch = 0 : i64, scratch_operands = 0 : i64, tpu.core_type = #tpu.core_type<tc>} {
    %c0 = arith.constant 0 : index
    %c0_0 = arith.constant 0 : index
    %0 = vector.load %arg1[%c0, %c0_0] : memref<128x128xf32, #tpu.memory_space<vmem>>, vector<128x128xf32>
    %c0_1 = arith.constant 0 : index
    %c0_2 = arith.constant 0 : index
    %1 = vector.load %arg0[%c0_1, %c0_2] : memref<128x128xbf16, #tpu.memory_space<vmem>>, vector<128x128xbf16>
    %c0_3 = arith.constant 0 : index
    %c0_4 = arith.constant 0 : index
    %2 = vector.load %arg3[%c0_3, %c0_4] : memref<512x128xbf16, #tpu.memory_space<vmem>>, vector<128x128xbf16>
    %c0_5 = arith.constant 0 : index
    %c0_6 = arith.constant 0 : index
    %3 = vector.load %arg4[%c0_5, %c0_6] : memref<8x128xf32, #tpu.memory_space<vmem>>, vector<1x128xf32>
    %cst = arith.constant dense<0.000000e+00> : vector<128x128xf32>
    %4 = tpu.matmul %1, %2, %cst {dimension_numbers = #tpu.dot_dimension_numbers<[1], [0], [0], [1], [0, 0, 1, 1], [], []>} : vector<128x128xbf16>, vector<128x128xbf16>, vector<128x128xf32> -> vector<128x128xf32>
    %5 = vector.extract_strided_slice %4 {offsets = [0, 32], sizes = [128, 1], strides = [1, 1]} : vector<128x128xf32> to vector<128x1xf32>
    %6 = tpu.transpose %4, [1, 0] : vector<128x128xf32> -> vector<128x128xf32>
    %7 = vector.extract_strided_slice %6 {offsets = [33, 0], sizes = [1, 128], strides = [1, 1]} : vector<128x128xf32> to vector<1x128xf32>
    %8 = arith.truncf %4 : vector<128x128xf32> to vector<128x128xbf16>
    %9 = vector.broadcast %5 : vector<128x1xf32> to vector<128x128xf32>
    %10 = vector.broadcast %7 : vector<1x128xf32> to vector<128x128xf32>
    %11 = arith.addf %9, %10 : vector<128x128xf32>
    %cst_7 = arith.constant 0.000000e+00 : f32
    %12 = vector.broadcast %cst_7 : f32 to vector<128x128xf32>
    %13 = arith.cmpf ogt, %11, %12 : vector<128x128xf32>
    %cst_8 = arith.constant 2.000000e-01 : f32
    %14 = vector.broadcast %cst_8 : f32 to vector<128x128xf32>
    %15 = arith.mulf %14, %11 : vector<128x128xf32>
    %16 = arith.select %13, %11, %15 : vector<128x128xi1>, vector<128x128xf32>
    %17 = arith.addf %16, %0 : vector<128x128xf32>
    %cst_9 = arith.constant dense<0xFF800000> : vector<128xf32>
    %18 = vector.multi_reduction <maximumf>, %17, %cst_9 [1] : vector<128x128xf32> to vector<128xf32>
    %19 = vector.shape_cast %18 : vector<128xf32> to vector<128x1xf32>
    %20 = vector.broadcast %19 : vector<128x1xf32> to vector<128x128xf32>
    %21 = arith.subf %17, %20 : vector<128x128xf32>
    %22 = math.exp %21 : vector<128x128xf32>
    %cst_10 = arith.constant dense<0.000000e+00> : vector<128xf32>
    %23 = vector.multi_reduction <add>, %22, %cst_10 [1] : vector<128x128xf32> to vector<128xf32>
    %24 = vector.shape_cast %23 : vector<128xf32> to vector<128x1xf32>
    %25 = tpu.reciprocal %24 {approx = true} : vector<128x1xf32> -> vector<128x1xf32>
    %26 = vector.broadcast %25 : vector<128x1xf32> to vector<128x128xf32>
    %27 = arith.mulf %22, %26 : vector<128x128xf32>
    %28 = arith.truncf %27 : vector<128x128xf32> to vector<128x128xbf16>
    %cst_11 = arith.constant dense<0.000000e+00> : vector<128x128xf32>
    %29 = tpu.matmul %28, %8, %cst_11 {dimension_numbers = #tpu.dot_dimension_numbers<[1], [0], [0], [1], [0, 0, 1, 1], [], []>} : vector<128x128xbf16>, vector<128x128xbf16>, vector<128x128xf32> -> vector<128x128xf32>
    %30 = vector.broadcast %3 : vector<1x128xf32> to vector<128x128xf32>
    %31 = arith.addf %29, %30 : vector<128x128xf32>
    %cst_12 = arith.constant 0.000000e+00 : f32
    %32 = vector.broadcast %cst_12 : f32 to vector<128x128xf32>
    %33 = arith.maximumf %31, %32 : vector<128x128xf32>
    %34 = arith.truncf %33 : vector<128x128xf32> to vector<128x128xbf16>
    %c128 = arith.constant 128 : index
    %c0_13 = arith.constant 0 : index
    %35 = vector.load %arg3[%c128, %c0_13] : memref<512x128xbf16, #tpu.memory_space<vmem>>, vector<128x128xbf16>
    %c1 = arith.constant 1 : index
    %c0_14 = arith.constant 0 : index
    %36 = vector.load %arg4[%c1, %c0_14] : memref<8x128xf32, #tpu.memory_space<vmem>>, vector<1x128xf32>
    %cst_15 = arith.constant dense<0.000000e+00> : vector<128x128xf32>
    %37 = tpu.matmul %34, %35, %cst_15 {dimension_numbers = #tpu.dot_dimension_numbers<[1], [0], [0], [1], [0, 0, 1, 1], [], []>} : vector<128x128xbf16>, vector<128x128xbf16>, vector<128x128xf32> -> vector<128x128xf32>
    %38 = vector.extract_strided_slice %37 {offsets = [0, 32], sizes = [128, 1], strides = [1, 1]} : vector<128x128xf32> to vector<128x1xf32>
    %39 = tpu.transpose %37, [1, 0] : vector<128x128xf32> -> vector<128x128xf32>
    %40 = vector.extract_strided_slice %39 {offsets = [33, 0], sizes = [1, 128], strides = [1, 1]} : vector<128x128xf32> to vector<1x128xf32>
    %41 = arith.truncf %37 : vector<128x128xf32> to vector<128x128xbf16>
    %42 = vector.broadcast %38 : vector<128x1xf32> to vector<128x128xf32>
    %43 = vector.broadcast %40 : vector<1x128xf32> to vector<128x128xf32>
    %44 = arith.addf %42, %43 : vector<128x128xf32>
    %cst_16 = arith.constant 0.000000e+00 : f32
    %45 = vector.broadcast %cst_16 : f32 to vector<128x128xf32>
    %46 = arith.cmpf ogt, %44, %45 : vector<128x128xf32>
    %cst_17 = arith.constant 2.000000e-01 : f32
    %47 = vector.broadcast %cst_17 : f32 to vector<128x128xf32>
    %48 = arith.mulf %47, %44 : vector<128x128xf32>
    %49 = arith.select %46, %44, %48 : vector<128x128xi1>, vector<128x128xf32>
    %50 = arith.addf %49, %0 : vector<128x128xf32>
    %cst_18 = arith.constant dense<0xFF800000> : vector<128xf32>
    %51 = vector.multi_reduction <maximumf>, %50, %cst_18 [1] : vector<128x128xf32> to vector<128xf32>
    %52 = vector.shape_cast %51 : vector<128xf32> to vector<128x1xf32>
    %53 = vector.broadcast %52 : vector<128x1xf32> to vector<128x128xf32>
    %54 = arith.subf %50, %53 : vector<128x128xf32>
    %55 = math.exp %54 : vector<128x128xf32>
    %cst_19 = arith.constant dense<0.000000e+00> : vector<128xf32>
    %56 = vector.multi_reduction <add>, %55, %cst_19 [1] : vector<128x128xf32> to vector<128xf32>
    %57 = vector.shape_cast %56 : vector<128xf32> to vector<128x1xf32>
    %58 = tpu.reciprocal %57 {approx = true} : vector<128x1xf32> -> vector<128x1xf32>
    %59 = vector.broadcast %58 : vector<128x1xf32> to vector<128x128xf32>
    %60 = arith.mulf %55, %59 : vector<128x128xf32>
    %61 = arith.truncf %60 : vector<128x128xf32> to vector<128x128xbf16>
    %cst_20 = arith.constant dense<0.000000e+00> : vector<128x128xf32>
    %62 = tpu.matmul %61, %41, %cst_20 {dimension_numbers = #tpu.dot_dimension_numbers<[1], [0], [0], [1], [0, 0, 1, 1], [], []>} : vector<128x128xbf16>, vector<128x128xbf16>, vector<128x128xf32> -> vector<128x128xf32>
    %63 = vector.broadcast %36 : vector<1x128xf32> to vector<128x128xf32>
    %64 = arith.addf %62, %63 : vector<128x128xf32>
    %cst_21 = arith.constant 0.000000e+00 : f32
    %65 = vector.broadcast %cst_21 : f32 to vector<128x128xf32>
    %66 = arith.maximumf %64, %65 : vector<128x128xf32>
    %c0_22 = arith.constant 0 : index
    %c0_23 = arith.constant 0 : index
    %67 = vector.load %arg2[%c0_22, %c0_23] : memref<8x128xbf16, #tpu.memory_space<vmem>>, vector<8x128xbf16>
    %68 = arith.truncf %66 : vector<128x128xf32> to vector<128x128xbf16>
    %cst_24 = arith.constant dense<0.000000e+00> : vector<8x128xf32>
    %69 = tpu.matmul %67, %68, %cst_24 {dimension_numbers = #tpu.dot_dimension_numbers<[1], [0], [0], [1], [0, 0, 1, 1], [], []>} : vector<8x128xbf16>, vector<128x128xbf16>, vector<8x128xf32> -> vector<8x128xf32>
    %70 = arith.truncf %69 : vector<8x128xf32> to vector<8x128xbf16>
    %c256 = arith.constant 256 : index
    %c0_25 = arith.constant 0 : index
    %71 = vector.load %arg3[%c256, %c0_25] : memref<512x128xbf16, #tpu.memory_space<vmem>>, vector<128x128xbf16>
    %cst_26 = arith.constant dense<0.000000e+00> : vector<8x128xf32>
    %72 = tpu.matmul %70, %71, %cst_26 {dimension_numbers = #tpu.dot_dimension_numbers<[1], [0], [0], [1], [0, 0, 1, 1], [], []>} : vector<8x128xbf16>, vector<128x128xbf16>, vector<8x128xf32> -> vector<8x128xf32>
    %c2 = arith.constant 2 : index
    %c0_27 = arith.constant 0 : index
    %73 = vector.load %arg4[%c2, %c0_27] : memref<8x128xf32, #tpu.memory_space<vmem>>, vector<1x128xf32>
    %74 = vector.broadcast %73 : vector<1x128xf32> to vector<8x128xf32>
    %75 = arith.addf %72, %74 : vector<8x128xf32>
    %cst_28 = arith.constant 0.000000e+00 : f32
    %76 = vector.broadcast %cst_28 : f32 to vector<8x128xf32>
    %77 = arith.maximumf %75, %76 : vector<8x128xf32>
    %78 = arith.truncf %77 : vector<8x128xf32> to vector<8x128xbf16>
    %c384 = arith.constant 384 : index
    %c0_29 = arith.constant 0 : index
    %79 = vector.load %arg3[%c384, %c0_29] : memref<512x128xbf16, #tpu.memory_space<vmem>>, vector<128x128xbf16>
    %cst_30 = arith.constant dense<0.000000e+00> : vector<8x128xf32>
    %80 = tpu.matmul %78, %79, %cst_30 {dimension_numbers = #tpu.dot_dimension_numbers<[1], [0], [0], [1], [0, 0, 1, 1], [], []>} : vector<8x128xbf16>, vector<128x128xbf16>, vector<8x128xf32> -> vector<8x128xf32>
    %c3 = arith.constant 3 : index
    %c0_31 = arith.constant 0 : index
    %81 = vector.load %arg4[%c3, %c0_31] : memref<8x128xf32, #tpu.memory_space<vmem>>, vector<1x128xf32>
    %82 = vector.broadcast %81 : vector<1x128xf32> to vector<8x128xf32>
    %83 = arith.addf %80, %82 : vector<8x128xf32>
    %84 = tpu.iota {dimensions = array<i32: 1>} : vector<8x128xi32>
    %c2_i32 = arith.constant 2 : i32
    %85 = vector.broadcast %c2_i32 : i32 to vector<8x128xi32>
    %86 = arith.cmpi slt, %84, %85 : vector<8x128xi32>
    %cst_32 = arith.constant -1.000000e+30 : f32
    %87 = vector.broadcast %cst_32 : f32 to vector<8x128xf32>
    %88 = arith.select %86, %83, %87 : vector<8x128xi1>, vector<8x128xf32>
    %cst_33 = arith.constant dense<0xFF800000> : vector<8xf32>
    %89 = vector.multi_reduction <maximumf>, %88, %cst_33 [1] : vector<8x128xf32> to vector<8xf32>
    %90 = vector.shape_cast %89 : vector<8xf32> to vector<8x1xf32>
    %91 = vector.broadcast %90 : vector<8x1xf32> to vector<8x128xf32>
    %92 = arith.subf %88, %91 : vector<8x128xf32>
    %93 = math.exp %92 : vector<8x128xf32>
    %cst_34 = arith.constant dense<0.000000e+00> : vector<8xf32>
    %94 = vector.multi_reduction <add>, %93, %cst_34 [1] : vector<8x128xf32> to vector<8xf32>
    %95 = vector.shape_cast %94 : vector<8xf32> to vector<8x1xf32>
    %96 = math.log %95 : vector<8x1xf32>
    %97 = vector.broadcast %96 : vector<8x1xf32> to vector<8x128xf32>
    %98 = arith.subf %92, %97 : vector<8x128xf32>
    %c0_35 = arith.constant 0 : index
    %c0_36 = arith.constant 0 : index
    %99 = vector.load %arg5[%c0_35, %c0_36] : memref<8x128xf32, #tpu.memory_space<vmem>>, vector<8x128xf32>
    tpu.vector_store %arg5[%c0_35, %c0_36], %98 {strides = array<i32>} : memref<8x128xf32, #tpu.memory_space<vmem>>, vector<8x128xf32>,
    return
  }
}

</mosaic_0001>

<bundles_post_ra>
// kernel: gnn_graph_forward.1
= control target key start
LH: loop header
LB: loop body
LE: loop exit
PB: predicated region body
PF: predicated region fallthrough
CT: control target
= control target key end

     0   :  { %v2168_v1 = vmov 32   ;;  %v383_v51 = vlaneseq  ;;  %s2791_s3 = inlined_call_operand.vmem [shape: bf16[512,128], index: 3, kind: input, shape index: {}]   ;;  %s2792_s0 = inlined_call_operand.vmem [shape: bf16[128,128], index: 0, kind: input, shape index: {}]   ;;  %s2793_s1 = inlined_call_operand.vmem [shape: f32[128,128], index: 1, kind: input, shape index: {}]   ;;  %s2794_s4 = inlined_call_operand.vmem [shape: f32[8,128], index: 4, kind: input, shape index: {}]   ;;  %s2795_s2 = inlined_call_operand.vmem [shape: bf16[8,128], index: 2, kind: input, shape index: {}]   ;;  %s2796_s5 = inlined_call_operand.vmem [shape: f32[8,128], index: 5, kind: output, shape index: {}]  }
   0x1   :  { %v1996_v0 = vld [vmem:[%s2791_s3] sm:$0xff]   ;;  %1994 = vset.pattern.permute.xlu1 %v2168_v1  ;;  %1995 = vset.pattern.permute.xlu0 %v2168_v1  ;;  %v1997_v2 = vld [vmem:[%s2791_s3 + $0x8] sm:$0xff]   ;;  %v1998_v3 = vld [vmem:[%s2791_s3 + $0x10] sm:$0xff]  }
   0x2   :  { %1803 = vmatprep.subr.bf16.mxu0 %v1996_v0  ;;  %v1999_v4 = vld [vmem:[%s2791_s3 + $0x18] sm:$0xff]   ;;  %v2004_v5 = vld [vmem:[%s2792_s0] sm:$0xff]   ;;  %v2001_v7 = vld [vmem:[%s2791_s3 + $0x28] sm:$0xff]   ;;  %v2254_v54 = vshrl.u32 %v383_v51, 7 }
   0x3   :  { %1804 = vmatpush3.bf16.msra.mxu0 %v1996_v0  ;;  %1819 = vmatprep.mubr.bf16.mxu0 %v2004_v5  ;;  %v2000_v6 = vld [vmem:[%s2791_s3 + $0x20] sm:$0xff]   ;;  %v2002_v8 = vld [vmem:[%s2791_s3 + $0x30] sm:$0xff]   ;;  %v2003_v9 = vld [vmem:[%s2791_s3 + $0x38] sm:$0xff]  }
   0x4   :  { %1805 = vmatprep.subr.bf16.mxu0 %v1997_v2  ;;  %v2005_v10 = vld [vmem:[%s2792_s0 + $0x8] sm:$0xff]   ;;  %v2006_v11 = vld [vmem:[%s2792_s0 + $0x10] sm:$0xff]   ;;  %v2007_v12 = vld [vmem:[%s2792_s0 + $0x18] sm:$0xff]   ;;  %v385_v57 = vsub.s32 1, %v2254_v54 }
   0x5   :  { %v2008_v13 = vld [vmem:[%s2792_s0 + $0x20] sm:$0xff]   ;;  %v2009_v14 = vld [vmem:[%s2792_s0 + $0x28] sm:$0xff]   ;;  %v2010_v15 = vld [vmem:[%s2792_s0 + $0x30] sm:$0xff]  }
   0x6   :  { %v2011_v16 = vld [vmem:[%s2792_s0 + $0x38] sm:$0xff]  }
   0x7   :  { %1806 = vmatpush3.bf16.msra.mxu0 %v1997_v2  ;;  %v2267_v0 = vld [vmem:[%s2793_s1 + $0x58] sm:$0xff]  ;;  %v2272_v2 = vld [vmem:[%s2793_s1] sm:$0xff] }
   0x8   :  { %1807 = vmatprep.subr.bf16.mxu0 %v1998_v3 }
   0xb   :  { %1808 = vmatpush3.bf16.msra.mxu0 %v1998_v3 }
   0xc   :  { %1809 = vmatprep.subr.bf16.mxu0 %v1999_v4 }
   0xf   :  { %1810 = vmatpush3.bf16.msra.mxu0 %v1999_v4 }
  0x10   :  { %1811 = vmatprep.subr.bf16.mxu0 %v2000_v6 }
  0x13   :  { %1812 = vmatpush3.bf16.msra.mxu0 %v2000_v6 }
  0x14   :  { %1813 = vmatprep.subr.bf16.mxu0 %v2001_v7 }
  0x17   :  { %1814 = vmatpush3.bf16.msra.mxu0 %v2001_v7 }
  0x18   :  { %1815 = vmatprep.subr.bf16.mxu0 %v2002_v8 }
  0x1b   :  { %1816 = vmatpush3.bf16.msra.mxu0 %v2002_v8 }
  0x1c   :  { %1817 = vmatprep.subr.bf16.mxu0 %v2003_v9 }
  0x1f   :  { %1818 = vmatpush3.bf16.msra.mxu0 %v2003_v9 }
  0x22   :  { %1820 = vmatmul.mubr.bf16.vlgmr.msra.gmra.mrb[0].mxu0 %v2005_v10  ;;  %v2285_v10 = vld [vmem:[%s2793_s1 + $0x8] sm:$0xff] }
  0x23   :  { %1823 = vmatprep.mubr.bf16.mxu0 %v2006_v11 }
  0x2a   :  { %1824 = vmatmul.mubr.bf16.gmra.mrb[4].mxu0 %v2007_v12 }
  0x2b   :  { %1827 = vmatprep.mubr.bf16.mxu0 %v2008_v13 }
  0x32   :  { %1828 = vmatmul.mubr.bf16.gmra.mrb[8].mxu0 %v2009_v14 }
  0x33   :  { %1831 = vmatprep.mubr.bf16.mxu0 %v2010_v15  ;;  %v2295_v15 = vld [vmem:[%s2793_s1 + $0x10] sm:$0xff] }
  0x3a   :  { %1832 = vmatmul.mubr.bf16.gmra.mrb[12].mxu0 %v2011_v16 }
  0xf5   :  { %v1821_v17 = vpop.f32.mrb[0].mxu0 }
  0xf6   :  { %315 = vperm.xlu1 %1994, %v1821_v17   ;;  %v200_v18 = vpop.f32.mrb[1].mxu0 }
  0xf7   :  { %305 = vperm.xlu0 %1995, %v200_v18   ;;  %v1822_v19 = vpop.f32.mrb[2].mxu0 }
  0xf8   :  { %v296_v20 = vpack.c.bf16 %v1822_v19, %v1821_v17  ;;  %v203_v21 = vpop.f32.mrb[3].mxu0 }
  0xf9   :  { %v295_v22 = vpack.c.bf16 %v203_v21, %v200_v18 }
  0xfa   :  { %320 = vperm.xlu1 %1994, %v1822_v19  }
  0xfb   :  { %310 = vperm.xlu0 %1995, %v203_v21   ;;  %1835 = vmatprep.subr.bf16.mxu1 %v295_v22 }
  0xfc   :  { %1836 = vmatpush3.bf16.msra.mxu1 %v295_v22 }
  0xfd   :  { %v1825_v23 = vpop.f32.mrb[4].mxu0  ;;  %1837 = vmatprep.subr.bf16.mxu1 %v296_v20 }
  0xfe   :  { %v216_v24 = vpop.f32.mrb[5].mxu0 }
  0xff   :  { %335 = vperm.xlu0 %1995, %v1825_v23   ;;  %v1826_v25 = vpop.f32.mrb[6].mxu0 }
 0x100   :  { %v298_v26 = vpack.c.bf16 %v1826_v25, %v1825_v23  ;;  %1838 = vmatpush3.bf16.msra.mxu1 %v296_v20  ;;  %340 = vperm.xlu1 %1994, %v1826_v25   ;;  %v219_v27 = vpop.f32.mrb[7].mxu0  ;;  %v2305_v20 = vld [vmem:[%s2793_s1 + $0x18] sm:$0xff] }
 0x101   :  { %v297_v28 = vpack.c.bf16 %v219_v27, %v216_v24 }
 0x103   :  { %325 = vperm.xlu0 %1995, %v216_v24   ;;  %1839 = vmatprep.subr.bf16.mxu1 %v297_v28 }
 0x104   :  { %330 = vperm.xlu1 %1994, %v219_v27   ;;  %1840 = vmatpush3.bf16.msra.mxu1 %v297_v28 }
 0x105   :  { %v1829_v29 = vpop.f32.mrb[8].mxu0  ;;  %1841 = vmatprep.subr.bf16.mxu1 %v298_v26 }
 0x106   :  { %v232_v30 = vpop.f32.mrb[9].mxu0 }
 0x107   :  { %355 = vperm.xlu0 %1995, %v1829_v29   ;;  %v1830_v31 = vpop.f32.mrb[10].mxu0 }
 0x108   :  { %v300_v32 = vpack.c.bf16 %v1830_v31, %v1829_v29  ;;  %1842 = vmatpush3.bf16.msra.mxu1 %v298_v26  ;;  %360 = vperm.xlu1 %1994, %v1830_v31   ;;  %v235_v33 = vpop.f32.mrb[11].mxu0 }
 0x109   :  { %v299_v34 = vpack.c.bf16 %v235_v33, %v232_v30 }
 0x10b   :  { %345 = vperm.xlu0 %1995, %v232_v30   ;;  %1843 = vmatprep.subr.bf16.mxu1 %v299_v34 }
 0x10c   :  { %350 = vperm.xlu1 %1994, %v235_v33   ;;  %1844 = vmatpush3.bf16.msra.mxu1 %v299_v34 }
 0x10d   :  { %1845 = vmatprep.subr.bf16.mxu1 %v300_v32  ;;  %v1833_v35 = vpop.f32.mrb[12].mxu0 }
 0x10e   :  { %v248_v36 = vpop.f32.mrb[13].mxu0 }
 0x10f   :  { %v1834_v37 = vpop.f32.mrb[14].mxu0 }
 0x110   :  { %1846 = vmatpush3.bf16.msra.mxu1 %v300_v32  ;;  %365 = vperm.xlu1 %1994, %v248_v36   ;;  %v302_v38 = vpack.c.bf16 %v1834_v37, %v1833_v35  ;;  %v251_v39 = vpop.f32.mrb[15].mxu0 }
 0x111   :  { %v301_v40 = vpack.c.bf16 %v251_v39, %v248_v36 }
 0x113   :  { %1847 = vmatprep.subr.bf16.mxu1 %v301_v40 }
 0x114   :  { %370 = vperm.xlu1 %1994, %v251_v39   ;;  %1848 = vmatpush3.bf16.msra.mxu1 %v301_v40 }
 0x115   :  { %1849 = vmatprep.subr.bf16.mxu1 %v302_v38 }
 0x118   :  { %375 = vperm.xlu1 %1994, %v1833_v35   ;;  %1850 = vmatpush3.bf16.msra.mxu1 %v302_v38 }
 0x11c   :  { %380 = vperm.xlu1 %1994, %v1834_v37  }
 0x129   :  { %263 = vxpose.xlu0.b32.start [1/16] (narrow) %v200_v18, 40 }
 0x12d   :  { %264 = vxpose.xlu0.b32.cont [2/16] (narrow) %v203_v21, 40 }
 0x131   :  { %265 = vxpose.xlu0.b32.cont [3/16] (narrow) %v1821_v17, 40 }
 0x135   :  { %266 = vxpose.xlu0.b32.cont [4/16] (narrow) %v1822_v19, 40 }
 0x139   :  { %267 = vxpose.xlu0.b32.cont [5/16] (narrow) %v216_v24, 40 }
 0x13d   :  { %268 = vxpose.xlu0.b32.cont [6/16] (narrow) %v219_v27, 40 }
 0x141   :  { %269 = vxpose.xlu0.b32.cont [7/16] (narrow) %v1825_v23, 40 }
 0x145   :  { %270 = vxpose.xlu0.b32.cont [8/16] (narrow) %v1826_v25, 40  ;;  %v2315_v25 = vld [vmem:[%s2793_s1 + $0x20] sm:$0xff] }
 0x149   :  { %271 = vxpose.xlu0.b32.cont [9/16] (narrow) %v232_v30, 40 }
 0x14d   :  { %272 = vxpose.xlu0.b32.cont [10/16] (narrow) %v235_v33, 40 }
 0x151   :  { %273 = vxpose.xlu0.b32.cont [11/16] (narrow) %v1829_v29, 40 }
 0x155   :  { %274 = vxpose.xlu0.b32.cont [12/16] (narrow) %v1830_v31, 40  ;;  %v2325_v31 = vld [vmem:[%s2793_s1 + $0x28] sm:$0xff] }
 0x159   :  { %275 = vxpose.xlu0.b32.cont [13/16] (narrow) %v248_v36, 40 }
 0x15d   :  { %276 = vxpose.xlu0.b32.cont [14/16] (narrow) %v251_v39, 40 }
 0x161   :  { %277 = vxpose.xlu0.b32.cont [15/16] (narrow) %v1833_v35, 40 }
 0x165   :  { %278 = vxpose.xlu0.b32.end [16/16] (narrow) %v1834_v37, 40  ;;  %v2335_v37 = vld [vmem:[%s2793_s1 + $0x30] sm:$0xff] }
 0x175   :  { %v316_v46 = vpop.permute.xlu1 %315 }
 0x176   :  { %v306_v41 = vpop.permute.xlu0 %305 }
 0x179   :  { %v321_v49 = vpop.permute.xlu1 %320 }
 0x17a   :  { %v311_v42 = vpop.permute.xlu0 %310 }
 0x17e   :  { %v336_v43 = vpop.permute.xlu0 %335 }
 0x17f   :  { %v341_v52 = vpop.permute.xlu1 %340 }
 0x182   :  { %v326_v44 = vpop.permute.xlu0 %325 }
 0x183   :  { %v331_v55 = vpop.permute.xlu1 %330 }
 0x186   :  { %v2249_v45 = vpop.permute.xlu0 %355 }
 0x187   :  { %v361_v60 = vpop.permute.xlu1 %360 }
 0x18a   :  { %v2251_v47 = vpop.permute.xlu0 %345 }
 0x18b   :  { %v351_v29 = vpop.permute.xlu1 %350 }
 0x18f   :  { %v366_v35 = vpop.permute.xlu1 %365 }
 0x1a9   :  { %v279_v48 = vpop.trf.xlu0 }
 0x1aa   :  { %v371_v48 = vpop.permute.xlu1 %370 }
 0x1ad   :  { %v280_v50 = vpop.trf.xlu0 }
 0x1b1   :  { %v281_v53 = vpop.trf.xlu0 }
 0x1b5   :  { %v282_v56 = vpop.trf.xlu0 }
 0x1b9   :  { %v283_v58 = vpop.trf.xlu0 }
 0x1ba   :  { %v2259_v59 = vrot.slane %v283_v58, %v385_v57  ;;  %v2367_v58 = vld [vmem:[%s2793_s1 + $0x48] sm:$0xff] }
 0x1bc   :  { %v398_v61 = vadd.f32 %v2259_v59, %v361_v60  ;;  %v387_v62 = vadd.f32 %v2259_v59, %v306_v41  ;;  %v388_v63 = vadd.f32 %v2259_v59, %v311_v42  ;;  %v389_v5 = vadd.f32 %v2259_v59, %v316_v46  ;;  %v2346_v42 = vld [vmem:[%s2793_s1 + $0x38] sm:$0xff] }
 0x1bd   :  { %v390_v13 = vadd.f32 %v2259_v59, %v321_v49  ;;  %v391_v18 = vadd.f32 %v2259_v59, %v326_v44  ;;  %v392_v23 = vadd.f32 %v2259_v59, %v331_v55  ;;  %v393_v28 = vadd.f32 %v2259_v59, %v336_v43  ;;  %v2356_v49 = vld [vmem:[%s2793_s1 + $0x40] sm:$0xff]  ;;  %v376_v55 = vpop.permute.xlu1 %375 }
 0x1be   :  { %vm414_vm0 = vcmp.gt.f32.partialorder %v398_v61, 0.0  ;;  %v430_v1 = vmul.f32 0.2, %v398_v61  ;;  %vm403_vm1 = vcmp.gt.f32.partialorder %v387_v62, 0.0  ;;  %v419_v3 = vmul.f32 0.2, %v387_v62 }
 0x1bf   :  { %v420_v4 = vmul.f32 0.2, %v388_v63  ;;  %vm404_vm2 = vcmp.gt.f32.partialorder %v388_v63, 0.0  ;;  %v421_v12 = vmul.f32 0.2, %v389_v5  ;;  %vm405_vm3 = vcmp.gt.f32.partialorder %v389_v5, 0.0 }
 0x1c0   :  { %v446_v6 = vsel %vm414_vm0, %v398_v61, %v430_v1  ;;  %v435_v8 = vsel %vm403_vm1, %v387_v62, %v419_v3  ;;  %v422_v17 = vmul.f32 0.2, %v390_v13  ;;  %vm406_vm4 = vcmp.gt.f32.partialorder %v390_v13, 0.0 }
 0x1c1   :  { %v2276_v7 = vadd.f32 %v446_v6, %v2267_v0  ;;  %v2279_v9 = vadd.f32 %v435_v8, %v2272_v2  ;;  %v436_v11 = vsel %vm404_vm2, %v388_v63, %v420_v4  ;;  %v437_v16 = vsel %vm405_vm3, %v389_v5, %v421_v12  ;;  %v2377_v63 = vld [vmem:[%s2793_s1 + $0x50] sm:$0xff] }
 0x1c2   :  { %v2290_v14 = vadd.f32 %v436_v11, %v2285_v10  ;;  %v2300_v19 = vadd.f32 %v437_v16, %v2295_v15  ;;  %v438_v21 = vsel %vm406_vm4, %v390_v13, %v422_v17  ;;  %v423_v22 = vmul.f32 0.2, %v391_v18  ;;  %v2387_v6 = vld [vmem:[%s2793_s1 + $0x70] sm:$0xff]  ;;  %v381_v13 = vpop.permute.xlu1 %380 }
 0x1c3   :  { %489 = vmax.xlane.f32.xlu0 %v2276_v7  ;;  %467 = vmax.xlane.f32.xlu1 %v2279_v9  ;;  %vm407_vm5 = vcmp.gt.f32.partialorder %v391_v18, 0.0  ;;  %v2310_v24 = vadd.f32 %v438_v21, %v2305_v20  ;;  %v424_v27 = vmul.f32 0.2, %v392_v23  ;;  %vm408_vm6 = vcmp.gt.f32.partialorder %v392_v23, 0.0 }
 0x1c4   :  { %v439_v26 = vsel %vm407_vm5, %v391_v18, %v423_v22  ;;  %v425_v33 = vmul.f32 0.2, %v393_v28  ;;  %v394_v34 = vadd.f32 %v2259_v59, %v341_v52  ;;  %vm409_vm7 = vcmp.gt.f32.partialorder %v393_v28, 0.0  ;;  %v2398_v18 = vld [vmem:[%s2793_s1 + $0x60] sm:$0xff] }
 0x1c5   :  { %v2320_v30 = vadd.f32 %v439_v26, %v2315_v25  ;;  %v440_v32 = vsel %vm408_vm6, %v392_v23, %v424_v27  ;;  %v395_v40 = vadd.f32 %v2259_v59, %v2251_v47  ;;  %v396_v46 = vadd.f32 %v2259_v59, %v351_v29  ;;  %v2407_v27 = vld [vmem:[%s2793_s1 + $0x68] sm:$0xff]  ;;  %v2416_v29 = vld [vmem:[%s2793_s1 + $0x78] sm:$0xff] }
 0x1c6   :  { %v2330_v36 = vadd.f32 %v440_v32, %v2325_v31  ;;  %v441_v38 = vsel %vm409_vm7, %v393_v28, %v425_v33  ;;  %v426_v39 = vmul.f32 0.2, %v394_v34  ;;  %vm410_vm8 = vcmp.gt.f32.partialorder %v394_v34, 0.0 }
 0x1c7   :  { %469 = vmax.xlane.f32.xlu1 %v2290_v14  ;;  %v2341_v41 = vadd.f32 %v441_v38, %v2335_v37  ;;  %v427_v44 = vmul.f32 0.2, %v395_v40  ;;  %vm411_vm9 = vcmp.gt.f32.partialorder %v395_v40, 0.0  ;;  %v428_v52 = vmul.f32 0.2, %v396_v46 }
 0x1c8   :  { %v442_v43 = vsel %vm410_vm8, %v394_v34, %v426_v39  ;;  %v397_v53 = vadd.f32 %v2259_v59, %v2249_v45  ;;  %vm412_vm10 = vcmp.gt.f32.partialorder %v396_v46, 0.0  ;;  %v401_v62 = vadd.f32 %v2259_v59, %v376_v55 }
 0x1c9   :  { %v2351_v47 = vadd.f32 %v442_v43, %v2346_v42  ;;  %v443_v50 = vsel %vm411_vm9, %v395_v40, %v427_v44  ;;  %v444_v60 = vsel %vm412_vm10, %v396_v46, %v428_v52  ;;  %v399_v4 = vadd.f32 %v2259_v59, %v366_v35 }
 0x1ca   :  { %v2362_v56 = vadd.f32 %v443_v50, %v2356_v49  ;;  %v429_v61 = vmul.f32 0.2, %v397_v53  ;;  %vm413_vm11 = vcmp.gt.f32.partialorder %v397_v53, 0.0  ;;  %v2372_v45 = vadd.f32 %v444_v60, %v2367_v58 }
 0x1cb   :  { %471 = vmax.xlane.f32.xlu1 %v2300_v19  ;;  %v433_v3 = vmul.f32 0.2, %v401_v62  ;;  %vm417_vm12 = vcmp.gt.f32.partialorder %v401_v62, 0.0  ;;  %v431_v11 = vmul.f32 0.2, %v399_v4  ;;  %v400_v12 = vadd.f32 %v2259_v59, %v371_v48 }
 0x1cc   :  { %v445_v1 = vsel %vm413_vm11, %v397_v53, %v429_v61  ;;  %vm415_vm13 = vcmp.gt.f32.partialorder %v399_v4, 0.0  ;;  %v402_v17 = vadd.f32 %v2259_v59, %v381_v13 }
 0x1cd   :  { %v2382_v5 = vadd.f32 %v445_v1, %v2377_v63  ;;  %v449_v8 = vsel %vm417_vm12, %v401_v62, %v433_v3  ;;  %v447_v21 = vsel %vm415_vm13, %v399_v4, %v431_v11  ;;  %v432_v22 = vmul.f32 0.2, %v400_v12 }
 0x1ce   :  { %v2392_v16 = vadd.f32 %v449_v8, %v2387_v6  ;;  %vm416_vm14 = vcmp.gt.f32.partialorder %v400_v12, 0.0  ;;  %v2402_v23 = vadd.f32 %v447_v21, %v2398_v18  ;;  %v434_v26 = vmul.f32 0.2, %v402_v17 }
 0x1cf   :  { %473 = vmax.xlane.f32.xlu1 %v2310_v24  ;;  %v448_v59 = vsel %vm416_vm14, %v400_v12, %v432_v22  ;;  %vm418_vm15 = vcmp.gt.f32.partialorder %v402_v17, 0.0 }
 0x1d0   :  { %v2411_v28 = vadd.f32 %v448_v59, %v2407_v27  ;;  %v450_v32 = vsel %vm418_vm15, %v402_v17, %v434_v26 }
 0x1d1   :  { %v2420_v33 = vadd.f32 %v450_v32, %v2416_v29 }
 0x1d3   :  { %475 = vmax.xlane.f32.xlu1 %v2320_v30 }
 0x1d7   :  { %477 = vmax.xlane.f32.xlu1 %v2330_v36 }
 0x1db   :  { %479 = vmax.xlane.f32.xlu1 %v2341_v41 }
 0x1df   :  { %481 = vmax.xlane.f32.xlu1 %v2351_v47 }
 0x1e3   :  { %483 = vmax.xlane.f32.xlu1 %v2362_v56 }
 0x1e7   :  { %485 = vmax.xlane.f32.xlu1 %v2372_v45 }
 0x1eb   :  { %487 = vmax.xlane.f32.xlu1 %v2382_v5 }
 0x1ef   :  { %495 = vmax.xlane.f32.xlu1 %v2392_v16 }
 0x1f3   :  { %491 = vmax.xlane.f32.xlu1 %v2402_v23 }
 0x1f7   :  { %493 = vmax.xlane.f32.xlu1 %v2411_v28 }
 0x1fb   :  { %497 = vmax.xlane.f32.xlu1 %v2420_v33 }
 0x250   :  { %v468_v34 = vpop.xlane.xlu1 %467  ;;  %v490_v21 = vpop.xlane.xlu0 %489 }
 0x251   :  { %v499_v35 = vsub.f32 %v2279_v9, %v468_v34  ;;  %v510_v59 = vsub.f32 %v2276_v7, %v490_v21 }
 0x253   :  { %v515_v38 = vmul.f32 1.442695, %v499_v35 }
 0x254   :  { %v470_v39 = vpop.xlane.xlu1 %469 }
 0x255   :  { %2036 = vpow2.f32 %v515_v38  ;;  %v500_v40 = vsub.f32 %v2290_v14, %v470_v39  ;;  %v537_v38 = vmul.f32 1.442695, %v510_v59 }
 0x257   :  { %v517_v43 = vmul.f32 1.442695, %v500_v40 }
 0x258   :  { %v472_v44 = vpop.xlane.xlu1 %471 }
 0x259   :  { %2038 = vpow2.f32 %v517_v43  ;;  %v501_v46 = vsub.f32 %v2300_v19, %v472_v44 }
 0x25b   :  { %v519_v48 = vmul.f32 1.442695, %v501_v46 }
 0x25c   :  { %v474_v50 = vpop.xlane.xlu1 %473 }
 0x25d   :  { %2040 = vpow2.f32 %v519_v48  ;;  %v502_v52 = vsub.f32 %v2310_v24, %v474_v50 }
 0x25f   :  { %v2427_v53 = vpop.eup %2036  ;;  %v521_v55 = vmul.f32 1.442695, %v502_v52 }
 0x260   :  { %547 = vadd.xlane.f32.xlu1 %v2427_v53  ;;  %v476_v9 = vpop.xlane.xlu1 %475 }
 0x261   :  { %2042 = vpow2.f32 %v521_v55  ;;  %v503_v60 = vsub.f32 %v2320_v30, %v476_v9 }
 0x263   :  { %v2431_v14 = vpop.eup %2038  ;;  %v523_v61 = vmul.f32 1.442695, %v503_v60 }
 0x264   :  { %549 = vadd.xlane.f32.xlu1 %v2431_v14  ;;  %v478_v19 = vpop.xlane.xlu1 %477 }
 0x265   :  { %2044 = vpow2.f32 %v523_v61  ;;  %v504_v62 = vsub.f32 %v2330_v36, %v478_v19 }
 0x267   :  { %v2435_v1 = vpop.eup %2040  ;;  %v525_v24 = vmul.f32 1.442695, %v504_v62 }
 0x268   :  { %551 = vadd.xlane.f32.xlu1 %v2435_v1  ;;  %v480_v3 = vpop.xlane.xlu1 %479 }
 0x269   :  { %2046 = vpow2.f32 %v525_v24  ;;  %v505_v4 = vsub.f32 %v2341_v41, %v480_v3 }
 0x26b   :  { %v2439_v8 = vpop.eup %2042  ;;  %v527_v30 = vmul.f32 1.442695, %v505_v4 }
 0x26c   :  { %553 = vadd.xlane.f32.xlu1 %v2439_v8  ;;  %v482_v11 = vpop.xlane.xlu1 %481 }
 0x26d   :  { %2048 = vpow2.f32 %v527_v30  ;;  %v506_v12 = vsub.f32 %v2351_v47, %v482_v11  ;;  %v2013_v30 = vld [vmem:[%s2791_s3 + $0x48] sm:$0xff]   ;;  %v2014_v11 = vld [vmem:[%s2791_s3 + $0x50] sm:$0xff]  }
 0x26f   :  { %v2443_v13 = vpop.eup %2044  ;;  %v529_v36 = vmul.f32 1.442695, %v506_v12  ;;  %v2015_v12 = vld [vmem:[%s2791_s3 + $0x58] sm:$0xff]  }
 0x270   :  { %555 = vadd.xlane.f32.xlu1 %v2443_v13  ;;  %v484_v17 = vpop.xlane.xlu1 %483 }
 0x271   :  { %2050 = vpow2.f32 %v529_v36  ;;  %v507_v22 = vsub.f32 %v2362_v56, %v484_v17  ;;  %v2016_v36 = vld [vmem:[%s2791_s3 + $0x60] sm:$0xff]   ;;  %v2017_v17 = vld [vmem:[%s2791_s3 + $0x68] sm:$0xff]  }
 0x273   :  { %v2447_v41 = vpop.eup %2046  ;;  %v531_v26 = vmul.f32 1.442695, %v507_v22 }
 0x274   :  { %557 = vadd.xlane.f32.xlu1 %v2447_v41  ;;  %v486_v32 = vpop.xlane.xlu1 %485 }
 0x275   :  { %2052 = vpow2.f32 %v531_v26  ;;  %v508_v47 = vsub.f32 %v2372_v45, %v486_v32 }
 0x277   :  { %v2452_v34 = vpop.eup %2048  ;;  %v533_v35 = vmul.f32 1.442695, %v508_v47 }
 0x278   :  { %559 = vadd.xlane.f32.xlu1 %v2452_v34  ;;  %v488_v39 = vpop.xlane.xlu1 %487 }
 0x279   :  { %2054 = vpow2.f32 %v533_v35  ;;  %v509_v56 = vsub.f32 %v2382_v5, %v488_v39 }
 0x27a   :  { %2056 = vpow2.f32 %v537_v38 }
 0x27b   :  { %v2456_v40 = vpop.eup %2050  ;;  %v535_v43 = vmul.f32 1.442695, %v509_v56 }
 0x27c   :  { %561 = vadd.xlane.f32.xlu0 %v2456_v40  ;;  %v496_v7 = vpop.xlane.xlu1 %495 }
 0x27d   :  { %2058 = vpow2.f32 %v535_v43  ;;  %v513_v45 = vsub.f32 %v2392_v16, %v496_v7 }
 0x27f   :  { %v2459_v44 = vpop.eup %2052  ;;  %v543_v52 = vmul.f32 1.442695, %v513_v45 }
 0x280   :  { %563 = vadd.xlane.f32.xlu1 %v2459_v44  ;;  %v492_v46 = vpop.xlane.xlu1 %491 }
 0x281   :  { %v511_v48 = vsub.f32 %v2402_v23, %v492_v46 }
 0x283   :  { %v2464_v50 = vpop.eup %2054  ;;  %v539_v5 = vmul.f32 1.442695, %v511_v48 }
 0x284   :  { %565 = vadd.xlane.f32.xlu0 %v2464_v50  ;;  %v494_v55 = vpop.xlane.xlu1 %493  ;;  %v2468_v60 = vpop.eup %2056 }
 0x285   :  { %2060 = vpow2.f32 %v539_v5  ;;  %v512_v9 = vsub.f32 %v2411_v28, %v494_v55 }
 0x286   :  { %2062 = vpow2.f32 %v543_v52 }
 0x287   :  { %v2470_v61 = vpop.eup %2058  ;;  %v541_v16 = vmul.f32 1.442695, %v512_v9 }
 0x288   :  { %569 = vadd.xlane.f32.xlu0 %v2468_v60  ;;  %567 = vadd.xlane.f32.xlu1 %v2470_v61  ;;  %v498_v23 = vpop.xlane.xlu1 %497 }
 0x289   :  { %2064 = vpow2.f32 %v541_v16  ;;  %v514_v19 = vsub.f32 %v2420_v33, %v498_v23  ;;  %v2012_v33 = vld [vmem:[%s2791_s3 + $0x40] sm:$0xff]  }
 0x28a   :  { %1867 = vmatprep.subr.bf16.mxu0 %v2012_v33 }
 0x28b   :  { %v545_v62 = vmul.f32 1.442695, %v514_v19  ;;  %1868 = vmatpush3.bf16.msra.mxu0 %v2012_v33 }
 0x28c   :  { %1869 = vmatprep.subr.bf16.mxu0 %v2013_v30 }
 0x28d   :  { %2066 = vpow2.f32 %v545_v62 }
 0x28f   :  { %v2475_v24 = vpop.eup %2060  ;;  %1870 = vmatpush3.bf16.msra.mxu0 %v2013_v30 }
 0x290   :  { %571 = vadd.xlane.f32.xlu1 %v2475_v24  ;;  %v2478_v28 = vpop.eup %2062  ;;  %1871 = vmatprep.subr.bf16.mxu0 %v2014_v11 }
 0x293   :  { %v2480_v3 = vpop.eup %2064  ;;  %1872 = vmatpush3.bf16.msra.mxu0 %v2014_v11 }
 0x294   :  { %575 = vadd.xlane.f32.xlu1 %v2478_v28  ;;  %573 = vadd.xlane.f32.xlu0 %v2480_v3 }
 0x295   :  { %1873 = vmatprep.subr.bf16.mxu0 %v2015_v12 }
 0x297   :  { %v2484_v4 = vpop.eup %2066  ;;  %1874 = vmatpush3.bf16.msra.mxu0 %v2015_v12 }
 0x298   :  { %577 = vadd.xlane.f32.xlu0 %v2484_v4  ;;  %1875 = vmatprep.subr.bf16.mxu0 %v2016_v36 }
 0x29b   :  { %1876 = vmatpush3.bf16.msra.mxu0 %v2016_v36 }
 0x29c   :  { %1877 = vmatprep.subr.bf16.mxu0 %v2017_v17 }
 0x29f   :  { %1878 = vmatpush3.bf16.msra.mxu0 %v2017_v17 }
 0x2ed   :  { %v548_v21 = vpop.xlane.xlu1 %547 }
 0x2ee   :  { %2068 = vrcp.f32 %v548_v21 }
 0x2f1   :  { %v550_v22 = vpop.xlane.xlu1 %549 }
 0x2f2   :  { %2070 = vrcp.f32 %v550_v22 }
 0x2f5   :  { %v552_v26 = vpop.xlane.xlu1 %551 }
 0x2f6   :  { %2072 = vrcp.f32 %v552_v26 }
 0x2f8   :  { %v2069_v32 = vpop.eup %2068 }
 0x2f9   :  { %v554_v59 = vpop.xlane.xlu1 %553  ;;  %v595_v38 = vmul.f32 %v2069_v32, %v2427_v53 }
 0x2fa   :  { %2074 = vrcp.f32 %v554_v59 }
 0x2fc   :  { %v2071_v47 = vpop.eup %2070 }
 0x2fd   :  { %v556_v35 = vpop.xlane.xlu1 %555  ;;  %v596_v39 = vmul.f32 %v2071_v47, %v2431_v14 }
 0x2fe   :  { %2076 = vrcp.f32 %v556_v35 }
 0x2ff   :  { %v611_v56 = vpack.c.bf16 %v596_v39, %v595_v38 }
 0x300   :  { %v2073_v7 = vpop.eup %2072 }
 0x301   :  { %1851 = vmatprep.mubr.bf16.mxu1 %v611_v56  ;;  %v558_v43 = vpop.xlane.xlu1 %557  ;;  %v597_v48 = vmul.f32 %v2073_v7, %v2435_v1 }
 0x302   :  { %2078 = vrcp.f32 %v558_v43 }
 0x304   :  { %v2075_v45 = vpop.eup %2074 }
 0x305   :  { %v560_v46 = vpop.xlane.xlu1 %559  ;;  %v598_v5 = vmul.f32 %v2075_v45, %v2439_v8 }
 0x306   :  { %2080 = vrcp.f32 %v560_v46 }
 0x307   :  { %v612_v52 = vpack.c.bf16 %v598_v5, %v597_v48  ;;  %v2018_v5 = vld [vmem:[%s2791_s3 + $0x70] sm:$0xff]  }
 0x308   :  { %v2077_v9 = vpop.eup %2076  ;;  %1879 = vmatprep.subr.bf16.mxu0 %v2018_v5 }
 0x309   :  { %v562_v55 = vpop.xlane.xlu0 %561  ;;  %1852 = vmatmul.mubr.bf16.vlgmr.msra.gmra.mrb[0].mxu1 %v612_v52  ;;  %v599_v16 = vmul.f32 %v2077_v9, %v2443_v13  ;;  %1880 = vmatpush3.bf16.msra.mxu0 %v2018_v5 }
 0x30a   :  { %2082 = vrcp.f32 %v562_v55 }
 0x30c   :  { %v2079_v53 = vpop.eup %2078 }
 0x30d   :  { %v564_v14 = vpop.xlane.xlu1 %563  ;;  %v600_v23 = vmul.f32 %v2079_v53, %v2447_v41 }
 0x30e   :  { %2084 = vrcp.f32 %v564_v14 }
 0x30f   :  { %v613_v19 = vpack.c.bf16 %v600_v23, %v599_v16 }
 0x310   :  { %v2081_v33 = vpop.eup %2080 }
 0x311   :  { %v566_v62 = vpop.xlane.xlu0 %565  ;;  %1855 = vmatprep.mubr.bf16.mxu1 %v613_v19  ;;  %v601_v11 = vmul.f32 %v2081_v33, %v2452_v34 }
 0x312   :  { %2086 = vrcp.f32 %v566_v62 }
 0x314   :  { %v2083_v1 = vpop.eup %2082 }
 0x315   :  { %v570_v8 = vpop.xlane.xlu0 %569  ;;  %v568_v30 = vpop.xlane.xlu1 %567  ;;  %v602_v12 = vmul.f32 %v2083_v1, %v2456_v40 }
 0x316   :  { %2088 = vrcp.f32 %v570_v8 }
 0x317   :  { %2090 = vrcp.f32 %v568_v30  ;;  %v614_v36 = vpack.c.bf16 %v602_v12, %v601_v11 }
 0x318   :  { %v2085_v13 = vpop.eup %2084 }
 0x319   :  { %1856 = vmatmul.mubr.bf16.gmra.mrb[4].mxu1 %v614_v36  ;;  %v603_v21 = vmul.f32 %v2085_v13, %v2459_v44 }
 0x31c   :  { %v2087_v17 = vpop.eup %2086 }
 0x31d   :  { %v572_v41 = vpop.xlane.xlu1 %571  ;;  %v604_v22 = vmul.f32 %v2087_v17, %v2464_v50 }
 0x31e   :  { %2092 = vrcp.f32 %v572_v41 }
 0x31f   :  { %v615_v26 = vpack.c.bf16 %v604_v22, %v603_v21 }
 0x320   :  { %v2089_v59 = vpop.eup %2088 }
 0x321   :  { %v2091_v32 = vpop.eup %2090  ;;  %v574_v47 = vpop.xlane.xlu0 %573  ;;  %1859 = vmatprep.mubr.bf16.mxu1 %v615_v26  ;;  %v606_v34 = vmul.f32 %v2089_v59, %v2468_v60 }
 0x322   :  { %v576_v35 = vpop.xlane.xlu1 %575  ;;  %2094 = vrcp.f32 %v574_v47  ;;  %v605_v40 = vmul.f32 %v2091_v32, %v2470_v61 }
 0x323   :  { %2096 = vrcp.f32 %v576_v35 }
 0x324   :  { %v616_v38 = vpack.c.bf16 %v606_v34, %v605_v40 }
 0x325   :  { %v578_v39 = vpop.xlane.xlu0 %577 }
 0x326   :  { %2098 = vrcp.f32 %v578_v39  ;;  %1860 = vmatmul.mubr.bf16.gmra.mrb[8].mxu1 %v616_v38 }
 0x328   :  { %v2093_v44 = vpop.eup %2092 }
 0x329   :  { %v607_v50 = vmul.f32 %v2093_v44, %v2475_v24  ;;  %v2019_v24 = vld [vmem:[%s2791_s3 + $0x78] sm:$0xff]  }
 0x32a   :  { %1881 = vmatprep.subr.bf16.mxu0 %v2019_v24 }
 0x32b   :  { %1882 = vmatpush3.bf16.msra.mxu0 %v2019_v24 }
 0x32c   :  { %v2095_v56 = vpop.eup %2094 }
 0x32d   :  { %v608_v43 = vmul.f32 %v2095_v56, %v2480_v3  ;;  %v2097_v7 = vpop.eup %2096 }
 0x32e   :  { %v609_v60 = vmul.f32 %v2097_v7, %v2478_v28  ;;  %v1684_v28 = vld [vmem:[%s2794_s4] ss:$0 sm:$0xff] }
 0x32f   :  { %v617_v45 = vpack.c.bf16 %v608_v43, %v607_v50 }
 0x330   :  { %v2099_v46 = vpop.eup %2098 }
 0x331   :  { %1863 = vmatprep.mubr.bf16.mxu1 %v617_v45  ;;  %v610_v48 = vmul.f32 %v2099_v46, %v2484_v4 }
 0x333   :  { %v618_v61 = vpack.c.bf16 %v610_v48, %v609_v60 }
 0x335   :  { %1864 = vmatmul.mubr.bf16.gmra.mrb[12].mxu1 %v618_v61 }
 0x3dc   :  { %v1853_v3 = vpop.f32.mrb[0].mxu1 }
 0x3dd   :  { %v666_v4 = vadd.f32 %v1853_v3, %v1684_v28  ;;  %v657_v52 = vpop.f32.mrb[1].mxu1 }
 0x3de   :  { %v658_v55 = vadd.f32 %v1684_v28, %v657_v52  ;;  %v1854_v9 = vpop.f32.mrb[2].mxu1 }
 0x3df   :  { %v669_v53 = vadd.f32 %v1854_v9, %v1684_v28  ;;  %v660_v14 = vpop.f32.mrb[3].mxu1  ;;  %v722_v23 = vmax.f32 %v666_v4, 0.0 }
 0x3e0   :  { %v661_v16 = vadd.f32 %v1684_v28, %v660_v14  ;;  %v720_v62 = vmax.f32 %v658_v55, 0.0 }
 0x3e1   :  { %v723_v19 = vmax.f32 %v669_v53, 0.0 }
 0x3e2   :  { %v721_v33 = vmax.f32 %v661_v16, 0.0 }
 0x3e3   :  { %v737_v1 = vpack.c.bf16 %v723_v19, %v722_v23 }
 0x3e4   :  { %v736_v8 = vpack.c.bf16 %v721_v33, %v720_v62 }
 0x3e6   :  { %1883 = vmatprep.mubr.bf16.mxu0 %v736_v8 }
 0x3e7   :  { %1884 = vmatmul.mubr.bf16.vlgmr.msra.gmra.mrb[16].mxu0 %v737_v1 }
 0x3ec   :  { %v1857_v30 = vpop.f32.mrb[4].mxu1 }
 0x3ed   :  { %v682_v11 = vadd.f32 %v1857_v30, %v1684_v28  ;;  %v673_v12 = vpop.f32.mrb[5].mxu1 }
 0x3ee   :  { %v674_v36 = vadd.f32 %v1684_v28, %v673_v12  ;;  %v1858_v13 = vpop.f32.mrb[6].mxu1 }
 0x3ef   :  { %v685_v17 = vadd.f32 %v1858_v13, %v1684_v28  ;;  %v676_v41 = vpop.f32.mrb[7].mxu1  ;;  %v726_v22 = vmax.f32 %v682_v11, 0.0 }
 0x3f0   :  { %v677_v21 = vadd.f32 %v1684_v28, %v676_v41  ;;  %v724_v59 = vmax.f32 %v674_v36, 0.0 }
 0x3f1   :  { %v727_v26 = vmax.f32 %v685_v17, 0.0 }
 0x3f2   :  { %v725_v32 = vmax.f32 %v677_v21, 0.0 }
 0x3f3   :  { %v739_v47 = vpack.c.bf16 %v727_v26, %v726_v22 }
 0x3f4   :  { %v738_v35 = vpack.c.bf16 %v725_v32, %v724_v59 }
 0x3f6   :  { %1887 = vmatprep.mubr.bf16.mxu0 %v738_v35 }
 0x3f7   :  { %1888 = vmatmul.mubr.bf16.gmra.mrb[20].mxu0 %v739_v47 }
 0x3f9   :  { %v1861_v34 = vpop.f32.mrb[8].mxu1 }
 0x3fa   :  { %v698_v40 = vadd.f32 %v1861_v34, %v1684_v28  ;;  %v689_v38 = vpop.f32.mrb[9].mxu1 }
 0x3fb   :  { %v690_v39 = vadd.f32 %v1684_v28, %v689_v38  ;;  %v1862_v44 = vpop.f32.mrb[10].mxu1 }
 0x3fc   :  { %v701_v56 = vadd.f32 %v1862_v44, %v1684_v28  ;;  %v692_v50 = vpop.f32.mrb[11].mxu1  ;;  %v730_v7 = vmax.f32 %v698_v40, 0.0 }
 0x3fd   :  { %v693_v43 = vadd.f32 %v1684_v28, %v692_v50  ;;  %v728_v46 = vmax.f32 %v690_v39, 0.0 }
 0x3fe   :  { %v731_v45 = vmax.f32 %v701_v56, 0.0 }
 0x3ff   :  { %v729_v60 = vmax.f32 %v693_v43, 0.0 }
 0x400   :  { %v741_v48 = vpack.c.bf16 %v731_v45, %v730_v7 }
 0x401   :  { %v740_v61 = vpack.c.bf16 %v729_v60, %v728_v46 }
 0x403   :  { %1891 = vmatprep.mubr.bf16.mxu0 %v740_v61 }
 0x404   :  { %1892 = vmatmul.mubr.bf16.gmra.mrb[24].mxu0 %v741_v48 }
 0x408   :  { %v1865_v5 = vpop.f32.mrb[12].mxu1 }
 0x409   :  { %v714_v24 = vadd.f32 %v1865_v5, %v1684_v28  ;;  %v705_v3 = vpop.f32.mrb[13].mxu1 }
 0x40a   :  { %v706_v4 = vadd.f32 %v1684_v28, %v705_v3  ;;  %v1866_v52 = vpop.f32.mrb[14].mxu1 }
 0x40b   :  { %v717_v55 = vadd.f32 %v1866_v52, %v1684_v28  ;;  %v708_v9 = vpop.f32.mrb[15].mxu1  ;;  %v734_v14 = vmax.f32 %v714_v24, 0.0 }
 0x40c   :  { %v709_v53 = vadd.f32 %v1684_v28, %v708_v9  ;;  %v732_v23 = vmax.f32 %v706_v4, 0.0 }
 0x40d   :  { %v735_v16 = vmax.f32 %v717_v55, 0.0 }
 0x40e   :  { %v733_v19 = vmax.f32 %v709_v53, 0.0 }
 0x40f   :  { %v743_v62 = vpack.c.bf16 %v735_v16, %v734_v14 }
 0x410   :  { %v742_v33 = vpack.c.bf16 %v733_v19, %v732_v23 }
 0x412   :  { %1895 = vmatprep.mubr.bf16.mxu0 %v742_v33 }
 0x413   :  { %1896 = vmatmul.mubr.bf16.gmra.mrb[28].mxu0 %v743_v62 }
 0x4ba   :  { %v1885_v1 = vpop.f32.mrb[16].mxu0 }
 0x4bb   :  { %958 = vperm.xlu1 %1994, %v1885_v1   ;;  %v843_v8 = vpop.f32.mrb[17].mxu0 }
 0x4bc   :  { %v1886_v30 = vpop.f32.mrb[18].mxu0 }
 0x4bd   :  { %v939_v11 = vpack.c.bf16 %v1886_v30, %v1885_v1  ;;  %v846_v12 = vpop.f32.mrb[19].mxu0 }
 0x4be   :  { %v938_v36 = vpack.c.bf16 %v846_v12, %v843_v8  ;;  %953 = vperm.xlu0 %1995, %v846_v12  }
 0x4bf   :  { %948 = vperm.xlu1 %1994, %v843_v8  }
 0x4c0   :  { %1899 = vmatprep.subr.bf16.mxu1 %v938_v36 }
 0x4c1   :  { %1900 = vmatpush3.bf16.msra.mxu1 %v938_v36 }
 0x4c2   :  { %1901 = vmatprep.subr.bf16.mxu1 %v939_v11 }
 0x4c3   :  { %963 = vperm.xlu1 %1994, %v1886_v30  }
 0x4c5   :  { %1902 = vmatpush3.bf16.msra.mxu1 %v939_v11 }
 0x4ca   :  { %v1889_v28 = vpop.f32.mrb[20].mxu0 }
 0x4cb   :  { %978 = vperm.xlu0 %1995, %v1889_v28   ;;  %v859_v13 = vpop.f32.mrb[21].mxu0 }
 0x4cc   :  { %v1890_v17 = vpop.f32.mrb[22].mxu0 }
 0x4cd   :  { %v941_v41 = vpack.c.bf16 %v1890_v17, %v1889_v28  ;;  %983 = vperm.xlu1 %1994, %v1890_v17   ;;  %v862_v21 = vpop.f32.mrb[23].mxu0 }
 0x4ce   :  { %v940_v22 = vpack.c.bf16 %v862_v21, %v859_v13 }
 0x4cf   :  { %968 = vperm.xlu0 %1995, %v859_v13  }
 0x4d0   :  { %1903 = vmatprep.subr.bf16.mxu1 %v940_v22 }
 0x4d1   :  { %973 = vperm.xlu1 %1994, %v862_v21   ;;  %1904 = vmatpush3.bf16.msra.mxu1 %v940_v22 }
 0x4d2   :  { %1905 = vmatprep.subr.bf16.mxu1 %v941_v41 }
 0x4d5   :  { %1906 = vmatpush3.bf16.msra.mxu1 %v941_v41 }
 0x4d7   :  { %v1893_v26 = vpop.f32.mrb[24].mxu0 }
 0x4d8   :  { %998 = vperm.xlu0 %1995, %v1893_v26   ;;  %v875_v59 = vpop.f32.mrb[25].mxu0 }
 0x4d9   :  { %v1894_v32 = vpop.f32.mrb[26].mxu0 }
 0x4da   :  { %v943_v47 = vpack.c.bf16 %v1894_v32, %v1893_v26  ;;  %1003 = vperm.xlu1 %1994, %v1894_v32   ;;  %v878_v35 = vpop.f32.mrb[27].mxu0 }
 0x4db   :  { %v942_v34 = vpack.c.bf16 %v878_v35, %v875_v59 }
 0x4dc   :  { %988 = vperm.xlu0 %1995, %v875_v59  }
 0x4dd   :  { %1907 = vmatprep.subr.bf16.mxu1 %v942_v34 }
 0x4de   :  { %993 = vperm.xlu1 %1994, %v878_v35   ;;  %1908 = vmatpush3.bf16.msra.mxu1 %v942_v34 }
 0x4df   :  { %1909 = vmatprep.subr.bf16.mxu1 %v943_v47 }
 0x4e2   :  { %1910 = vmatpush3.bf16.msra.mxu1 %v943_v47 }
 0x4e6   :  { %v1897_v40 = vpop.f32.mrb[28].mxu0 }
 0x4e7   :  { %v891_v38 = vpop.f32.mrb[29].mxu0 }
 0x4e8   :  { %1008 = vperm.xlu1 %1994, %v891_v38   ;;  %v1898_v39 = vpop.f32.mrb[30].mxu0 }
 0x4e9   :  { %v945_v44 = vpack.c.bf16 %v1898_v39, %v1897_v40  ;;  %v894_v56 = vpop.f32.mrb[31].mxu0 }
 0x4ea   :  { %v944_v50 = vpack.c.bf16 %v894_v56, %v891_v38 }
 0x4ec   :  { %1013 = vperm.xlu1 %1994, %v894_v56   ;;  %1911 = vmatprep.subr.bf16.mxu1 %v944_v50 }
 0x4ed   :  { %1912 = vmatpush3.bf16.msra.mxu1 %v944_v50 }
 0x4ee   :  { %1913 = vmatprep.subr.bf16.mxu1 %v945_v44 }
 0x4f0   :  { %1018 = vperm.xlu1 %1994, %v1897_v40  }
 0x4f1   :  { %1914 = vmatpush3.bf16.msra.mxu1 %v945_v44 }
 0x4f4   :  { %1023 = vperm.xlu1 %1994, %v1898_v39  }
 0x4fa   :  { %906 = vxpose.xlu0.b32.start [1/16] (narrow) %v843_v8, 40 }
 0x4fe   :  { %907 = vxpose.xlu0.b32.cont [2/16] (narrow) %v846_v12, 40 }
 0x502   :  { %908 = vxpose.xlu0.b32.cont [3/16] (narrow) %v1885_v1, 40 }
 0x506   :  { %909 = vxpose.xlu0.b32.cont [4/16] (narrow) %v1886_v30, 40 }
 0x50a   :  { %910 = vxpose.xlu0.b32.cont [5/16] (narrow) %v859_v13, 40 }
 0x50e   :  { %911 = vxpose.xlu0.b32.cont [6/16] (narrow) %v862_v21, 40 }
 0x512   :  { %912 = vxpose.xlu0.b32.cont [7/16] (narrow) %v1889_v28, 40 }
 0x516   :  { %913 = vxpose.xlu0.b32.cont [8/16] (narrow) %v1890_v17, 40 }
 0x51a   :  { %914 = vxpose.xlu0.b32.cont [9/16] (narrow) %v875_v59, 40 }
 0x51e   :  { %915 = vxpose.xlu0.b32.cont [10/16] (narrow) %v878_v35, 40 }
 0x522   :  { %916 = vxpose.xlu0.b32.cont [11/16] (narrow) %v1893_v26, 40 }
 0x526   :  { %917 = vxpose.xlu0.b32.cont [12/16] (narrow) %v1894_v32, 40 }
 0x52a   :  { %918 = vxpose.xlu0.b32.cont [13/16] (narrow) %v891_v38, 40 }
 0x52e   :  { %919 = vxpose.xlu0.b32.cont [14/16] (narrow) %v894_v56, 40 }
 0x532   :  { %920 = vxpose.xlu0.b32.cont [15/16] (narrow) %v1897_v40, 40 }
 0x536   :  { %921 = vxpose.xlu0.b32.end [16/16] (narrow) %v1898_v39, 40 }
 0x53a   :  { %v959_v60 = vpop.permute.xlu1 %958 }
 0x53d   :  { %v954_v43 = vpop.permute.xlu0 %953 }
 0x53e   :  { %v949_v61 = vpop.permute.xlu1 %948 }
 0x542   :  { %v964_v24 = vpop.permute.xlu1 %963 }
 0x54a   :  { %v979_v7 = vpop.permute.xlu0 %978 }
 0x54c   :  { %v984_v4 = vpop.permute.xlu1 %983 }
 0x54e   :  { %v969_v45 = vpop.permute.xlu0 %968 }
 0x550   :  { %v974_v9 = vpop.permute.xlu1 %973 }
 0x557   :  { %v2530_v46 = vpop.permute.xlu0 %998 }
 0x559   :  { %v1004_v16 = vpop.permute.xlu1 %1003 }
 0x55b   :  { %v989_v48 = vpop.permute.xlu0 %988 }
 0x55d   :  { %v994_v34 = vpop.permute.xlu1 %993 }
 0x57a   :  { %v922_v5 = vpop.trf.xlu0 }
 0x57e   :  { %v923_v3 = vpop.trf.xlu0 }
 0x582   :  { %v924_v52 = vpop.trf.xlu0 }
 0x586   :  { %v925_v55 = vpop.trf.xlu0 }
 0x58a   :  { %v926_v53 = vpop.trf.xlu0 }
 0x58b   :  { %v2534_v14 = vrot.slane %v926_v53, %v385_v57 }
 0x58d   :  { %v1041_v23 = vadd.f32 %v2534_v14, %v1004_v16  ;;  %v1030_v19 = vadd.f32 %v2534_v14, %v949_v61  ;;  %v1031_v62 = vadd.f32 %v2534_v14, %v954_v43  ;;  %v1032_v33 = vadd.f32 %v2534_v14, %v959_v60 }
 0x58e   :  { %v1033_v13 = vadd.f32 %v2534_v14, %v964_v24  ;;  %v1035_v59 = vadd.f32 %v2534_v14, %v974_v9  ;;  %v1036_v35 = vadd.f32 %v2534_v14, %v979_v7  ;;  %v1037_v39 = vadd.f32 %v2534_v14, %v984_v4 }
 0x58f   :  { %vm1057_vm0 = vcmp.gt.f32.partialorder %v1041_v23, 0.0  ;;  %v1073_v1 = vmul.f32 0.2, %v1041_v23  ;;  %vm1046_vm1 = vcmp.gt.f32.partialorder %v1030_v19, 0.0  ;;  %v1062_v8 = vmul.f32 0.2, %v1030_v19 }
 0x590   :  { %vm1047_vm2 = vcmp.gt.f32.partialorder %v1031_v62, 0.0  ;;  %v1063_v30 = vmul.f32 0.2, %v1031_v62  ;;  %v1064_v28 = vmul.f32 0.2, %v1032_v33  ;;  %vm1048_vm3 = vcmp.gt.f32.partialorder %v1032_v33, 0.0 }
 0x591   :  { %v1089_v11 = vsel %vm1057_vm0, %v1041_v23, %v1073_v1  ;;  %v1078_v12 = vsel %vm1046_vm1, %v1030_v19, %v1062_v8  ;;  %v1065_v21 = vmul.f32 0.2, %v1033_v13  ;;  %vm1049_vm4 = vcmp.gt.f32.partialorder %v1033_v13, 0.0 }
 0x592   :  { %v2541_v54 = vadd.f32 %v1089_v11, %v2267_v0  ;;  %v2544_v57 = vadd.f32 %v1078_v12, %v2272_v2  ;;  %v1079_v36 = vsel %vm1047_vm2, %v1031_v62, %v1063_v30  ;;  %v1080_v41 = vsel %vm1048_vm3, %v1032_v33, %v1064_v28 }
 0x593   :  { %v2550_v17 = vadd.f32 %v1079_v36, %v2285_v10  ;;  %v1034_v0 = vadd.f32 %v2534_v14, %v969_v45  ;;  %v2555_v2 = vadd.f32 %v1080_v41, %v2295_v15  ;;  %v1081_v22 = vsel %vm1049_vm4, %v1033_v13, %v1065_v21 }
 0x594   :  { %1132 = vmax.xlane.f32.xlu0 %v2541_v54  ;;  %1110 = vmax.xlane.f32.xlu1 %v2544_v57  ;;  %v2560_v10 = vadd.f32 %v1081_v22, %v2305_v20  ;;  %v1067_v47 = vmul.f32 0.2, %v1035_v59  ;;  %vm1051_vm6 = vcmp.gt.f32.partialorder %v1035_v59, 0.0  ;;  %v1068_v38 = vmul.f32 0.2, %v1036_v35  ;;  %v1009_v20 = vpop.permute.xlu1 %1008 }
 0x595   :  { %v1066_v26 = vmul.f32 0.2, %v1034_v0  ;;  %vm1050_vm5 = vcmp.gt.f32.partialorder %v1034_v0, 0.0  ;;  %vm1052_vm7 = vcmp.gt.f32.partialorder %v1036_v35, 0.0  ;;  %v1069_v50 = vmul.f32 0.2, %v1037_v39 }
 0x596   :  { %v1083_v40 = vsel %vm1051_vm6, %v1035_v59, %v1067_v47  ;;  %v1084_v56 = vsel %vm1052_vm7, %v1036_v35, %v1068_v38  ;;  %v1038_v43 = vadd.f32 %v2534_v14, %v989_v48  ;;  %vm1053_vm8 = vcmp.gt.f32.partialorder %v1037_v39, 0.0 }
 0x597   :  { %v1082_v32 = vsel %vm1050_vm5, %v1034_v0, %v1066_v26  ;;  %v2570_v44 = vadd.f32 %v1083_v40, %v2325_v31  ;;  %v1085_v7 = vsel %vm1053_vm8, %v1037_v39, %v1069_v50  ;;  %v1039_v60 = vadd.f32 %v2534_v14, %v994_v34 }
 0x598   :  { %1112 = vmax.xlane.f32.xlu1 %v2550_v17  ;;  %v2565_v15 = vadd.f32 %v1082_v32, %v2315_v25  ;;  %v2575_v25 = vadd.f32 %v1084_v56, %v2335_v37  ;;  %v1070_v45 = vmul.f32 0.2, %v1038_v43  ;;  %v1014_v61 = vpop.permute.xlu1 %1013  ;;  %vm1054_vm9 = vcmp.gt.f32.partialorder %v1038_v43, 0.0 }
 0x599   :  { %v2580_v31 = vadd.f32 %v1085_v7, %v2346_v42  ;;  %v1071_v24 = vmul.f32 0.2, %v1039_v60  ;;  %v1040_v48 = vadd.f32 %v2534_v14, %v2530_v46  ;;  %vm1055_vm10 = vcmp.gt.f32.partialorder %v1039_v60, 0.0 }
 0x59a   :  { %v1086_v5 = vsel %vm1054_vm9, %v1038_v43, %v1070_v45  ;;  %v1042_v46 = vadd.f32 %v2534_v14, %v1009_v20  ;;  %v1043_v19 = vadd.f32 %v2534_v14, %v1014_v61  ;;  %vm2170_vm0 = vmmov 0  }
 0x59b   :  { %v2586_v3 = vadd.f32 %v1086_v5, %v2356_v49  ;;  %v1087_v4 = vsel %vm1055_vm10, %v1039_v60, %v1071_v24  ;;  %v1072_v52 = vmul.f32 0.2, %v1040_v48  ;;  %vm1056_vm11 = vcmp.gt.f32.partialorder %v1040_v48, 0.0 }
 0x59c   :  { %1114 = vmax.xlane.f32.xlu1 %v2555_v2  ;;  %v1019_v37 = vpop.permute.xlu1 %1018  ;;  %v2591_v42 = vadd.f32 %v1087_v4, %v2367_v58  ;;  %v1074_v23 = vmul.f32 0.2, %v1042_v46  ;;  %vm1058_vm13 = vcmp.gt.f32.partialorder %v1042_v46, 0.0  ;;  %v1075_v1 = vmul.f32 0.2, %v1043_v19 }
 0x59d   :  { %v1044_v55 = vadd.f32 %v2534_v14, %v1019_v37  ;;  %v1088_v9 = vsel %vm1056_vm11, %v1040_v48, %v1072_v52  ;;  %vm1059_vm14 = vcmp.gt.f32.partialorder %v1043_v19, 0.0 }
 0x59e   :  { %v2596_v49 = vadd.f32 %v1088_v9, %v2377_v63  ;;  %v1090_v33 = vsel %vm1058_vm13, %v1042_v46, %v1074_v23  ;;  %v1091_v30 = vsel %vm1059_vm14, %v1043_v19, %v1075_v1 }
 0x59f   :  { %v1076_v53 = vmul.f32 0.2, %v1044_v55  ;;  %vm1060_vm12 = vcmp.gt.f32.partialorder %v1044_v55, 0.0  ;;  %v2606_v63 = vadd.f32 %v1090_v33, %v2398_v18  ;;  %v2610_v12 = vadd.f32 %v1091_v30, %v2407_v27 }
 0x5a0   :  { %1116 = vmax.xlane.f32.xlu1 %v2560_v10  ;;  %v1024_v62 = vpop.permute.xlu1 %1023 }
 0x5a1   :  { %v1092_v16 = vsel %vm1060_vm12, %v1044_v55, %v1076_v53  ;;  %v1045_v8 = vadd.f32 %v2534_v14, %v1024_v62 }
 0x5a2   :  { %v2601_v58 = vadd.f32 %v1092_v16, %v2387_v6 }
 0x5a3   :  { %v1077_v11 = vmul.f32 0.2, %v1045_v8  ;;  %vm1061_vm15 = vcmp.gt.f32.partialorder %v1045_v8, 0.0 }
 0x5a4   :  { %1118 = vmax.xlane.f32.xlu1 %v2565_v15 }
 0x5a5   :  { %v1093_v6 = vsel %vm1061_vm15, %v1045_v8, %v1077_v11 }
 0x5a6   :  { %v2614_v36 = vadd.f32 %v1093_v6, %v2416_v29 }
 0x5a8   :  { %1120 = vmax.xlane.f32.xlu1 %v2570_v44 }
 0x5ac   :  { %1122 = vmax.xlane.f32.xlu1 %v2575_v25 }
 0x5b0   :  { %1124 = vmax.xlane.f32.xlu1 %v2580_v31 }
 0x5b4   :  { %1126 = vmax.xlane.f32.xlu1 %v2586_v3 }
 0x5b8   :  { %1128 = vmax.xlane.f32.xlu1 %v2591_v42 }
 0x5bc   :  { %1130 = vmax.xlane.f32.xlu1 %v2596_v49 }
 0x5c0   :  { %1138 = vmax.xlane.f32.xlu1 %v2601_v58 }
 0x5c4   :  { %1134 = vmax.xlane.f32.xlu1 %v2606_v63 }
 0x5c8   :  { %1136 = vmax.xlane.f32.xlu1 %v2610_v12 }
 0x5cc   :  { %1140 = vmax.xlane.f32.xlu1 %v2614_v36 }
 0x621   :  { %v1111_v14 = vpop.xlane.xlu1 %1110  ;;  %v1133_v45 = vpop.xlane.xlu0 %1132 }
 0x622   :  { %v1142_v18 = vsub.f32 %v2544_v57, %v1111_v14  ;;  %v1153_v5 = vsub.f32 %v2541_v54, %v1133_v45 }
 0x624   :  { %v1158_v28 = vmul.f32 1.442695, %v1142_v18  ;;  %v1180_v4 = vmul.f32 1.442695, %v1153_v5 }
 0x625   :  { %v1113_v13 = vpop.xlane.xlu1 %1112 }
 0x626   :  { %v1143_v41 = vsub.f32 %v2550_v17, %v1113_v13  ;;  %2100 = vpow2.f32 %v1158_v28 }
 0x628   :  { %v1160_v21 = vmul.f32 1.442695, %v1143_v41 }
 0x629   :  { %v1115_v0 = vpop.xlane.xlu1 %1114 }
 0x62a   :  { %2102 = vpow2.f32 %v1160_v21  ;;  %v1144_v27 = vsub.f32 %v2555_v2, %v1115_v0 }
 0x62c   :  { %v1162_v22 = vmul.f32 1.442695, %v1144_v27 }
 0x62d   :  { %v1117_v26 = vpop.xlane.xlu1 %1116 }
 0x62e   :  { %2104 = vpow2.f32 %v1162_v22  ;;  %v1145_v29 = vsub.f32 %v2560_v10, %v1117_v26 }
 0x630   :  { %v1164_v59 = vmul.f32 1.442695, %v1145_v29  ;;  %v2621_v32 = vpop.eup %2100 }
 0x631   :  { %v1119_v47 = vpop.xlane.xlu1 %1118  ;;  %1190 = vadd.xlane.f32.xlu1 %v2621_v32 }
 0x632   :  { %2106 = vpow2.f32 %v1164_v59  ;;  %v1146_v57 = vsub.f32 %v2565_v15, %v1119_v47 }
 0x634   :  { %v2625_v17 = vpop.eup %2102  ;;  %v1166_v35 = vmul.f32 1.442695, %v1146_v57 }
 0x635   :  { %v1121_v34 = vpop.xlane.xlu1 %1120  ;;  %1192 = vadd.xlane.f32.xlu1 %v2625_v17 }
 0x636   :  { %2108 = vpow2.f32 %v1166_v35  ;;  %v1147_v2 = vsub.f32 %v2570_v44, %v1121_v34 }
 0x638   :  { %v2629_v40 = vpop.eup %2104  ;;  %v1168_v10 = vmul.f32 1.442695, %v1147_v2 }
 0x639   :  { %v1123_v38 = vpop.xlane.xlu1 %1122  ;;  %1194 = vadd.xlane.f32.xlu1 %v2629_v40 }
 0x63a   :  { %2110 = vpow2.f32 %v1168_v10  ;;  %v1148_v39 = vsub.f32 %v2575_v25, %v1123_v38 }
 0x63c   :  { %v2633_v20 = vpop.eup %2106  ;;  %v1170_v15 = vmul.f32 1.442695, %v1148_v39 }
 0x63d   :  { %v1125_v56 = vpop.xlane.xlu1 %1124  ;;  %1196 = vadd.xlane.f32.xlu1 %v2633_v20 }
 0x63e   :  { %2112 = vpow2.f32 %v1170_v15  ;;  %v1149_v50 = vsub.f32 %v2580_v31, %v1125_v56 }
 0x640   :  { %v2637_v43 = vpop.eup %2108  ;;  %v1172_v44 = vmul.f32 1.442695, %v1149_v50 }
 0x641   :  { %v1127_v7 = vpop.xlane.xlu1 %1126  ;;  %1198 = vadd.xlane.f32.xlu1 %v2637_v43 }
 0x642   :  { %2114 = vpow2.f32 %v1172_v44  ;;  %v1150_v60 = vsub.f32 %v2586_v3, %v1127_v7 }
 0x644   :  { %v2641_v25 = vpop.eup %2110  ;;  %v1174_v61 = vmul.f32 1.442695, %v1150_v60 }
 0x645   :  { %v1129_v24 = vpop.xlane.xlu1 %1128  ;;  %1200 = vadd.xlane.f32.xlu1 %v2641_v25 }
 0x646   :  { %2116 = vpow2.f32 %v1174_v61  ;;  %v1151_v31 = vsub.f32 %v2591_v42, %v1129_v24 }
 0x648   :  { %v2646_v48 = vpop.eup %2112  ;;  %v1176_v37 = vmul.f32 1.442695, %v1151_v31 }
 0x649   :  { %v1131_v52 = vpop.xlane.xlu1 %1130  ;;  %1202 = vadd.xlane.f32.xlu1 %v2646_v48 }
 0x64a   :  { %2118 = vpow2.f32 %v1176_v37  ;;  %v1152_v3 = vsub.f32 %v2596_v49, %v1131_v52 }
 0x64b   :  { %2120 = vpow2.f32 %v1180_v4 }
 0x64c   :  { %v2650_v55 = vpop.eup %2114  ;;  %v1178_v9 = vmul.f32 1.442695, %v1152_v3 }
 0x64d   :  { %1204 = vadd.xlane.f32.xlu0 %v2650_v55  ;;  %v1139_v54 = vpop.xlane.xlu1 %1138 }
 0x64e   :  { %2122 = vpow2.f32 %v1178_v9  ;;  %v1156_v42 = vsub.f32 %v2601_v58, %v1139_v54 }
 0x650   :  { %v2653_v53 = vpop.eup %2116  ;;  %v1186_v19 = vmul.f32 1.442695, %v1156_v42 }
 0x651   :  { %1206 = vadd.xlane.f32.xlu1 %v2653_v53  ;;  %v1135_v46 = vpop.xlane.xlu1 %1134 }
 0x652   :  { %v1154_v16 = vsub.f32 %v2606_v63, %v1135_v46 }
 0x654   :  { %v2658_v23 = vpop.eup %2118  ;;  %v1182_v49 = vmul.f32 1.442695, %v1154_v16 }
 0x655   :  { %1208 = vadd.xlane.f32.xlu0 %v2658_v23  ;;  %v1137_v62 = vpop.xlane.xlu1 %1136  ;;  %v2662_v1 = vpop.eup %2120 }
 0x656   :  { %2124 = vpow2.f32 %v1182_v49  ;;  %v1155_v33 = vsub.f32 %v2610_v12, %v1137_v62 }
 0x657   :  { %2126 = vpow2.f32 %v1186_v19 }
 0x658   :  { %v2664_v8 = vpop.eup %2122  ;;  %v1184_v58 = vmul.f32 1.442695, %v1155_v33 }
 0x659   :  { %1212 = vadd.xlane.f32.xlu0 %v2662_v1  ;;  %1210 = vadd.xlane.f32.xlu1 %v2664_v8  ;;  %v1141_v63 = vpop.xlane.xlu1 %1140 }
 0x65a   :  { %2128 = vpow2.f32 %v1184_v58  ;;  %v1157_v30 = vsub.f32 %v2614_v36, %v1141_v63  ;;  %v2169_v63 = vmov 0.0  }
 0x65b   :  { %1931 = vmatprep.subr.bf16.mxu0 %v2169_v63  ;;  %1951 = vmatprep.subr.bf16.mxu1 %v2169_v63 }
 0x65c   :  { %v1188_v11 = vmul.f32 1.442695, %v1157_v30  ;;  %1947 = vmatprep.mubr.msk.bf16.mxu0 %vm2170_vm0, %v2169_v63  ;;  %v2020_v30 = vld [vmem:[%s2791_s3 + $0x80] sm:$0xff]  }
 0x65e   :  { %2130 = vpow2.f32 %v1188_v11  ;;  %v2021_v11 = vld [vmem:[%s2791_s3 + $0x88] sm:$0xff]  }
 0x660   :  { %v2669_v6 = vpop.eup %2124 }
 0x661   :  { %1214 = vadd.xlane.f32.xlu1 %v2669_v6  ;;  %v2672_v12 = vpop.eup %2126 }
 0x664   :  { %v2674_v14 = vpop.eup %2128 }
 0x665   :  { %1218 = vadd.xlane.f32.xlu1 %v2672_v12  ;;  %1216 = vadd.xlane.f32.xlu0 %v2674_v14 }
 0x668   :  { %v2678_v18 = vpop.eup %2130 }
 0x669   :  { %1220 = vadd.xlane.f32.xlu0 %v2678_v18 }
 0x6be   :  { %v1191_v28 = vpop.xlane.xlu1 %1190 }
 0x6bf   :  { %2132 = vrcp.f32 %v1191_v28  ;;  %v2026_v28 = vld [vmem:[%s2791_s3 + $0xb0] sm:$0xff]  }
 0x6c2   :  { %v1193_v36 = vpop.xlane.xlu1 %1192 }
 0x6c3   :  { %2134 = vrcp.f32 %v1193_v36  ;;  %v1693_v36 = vld [vmem:[%s2794_s4 + $0x1] ss:$0 sm:$0xff] }
 0x6c6   :  { %v1195_v13 = vpop.xlane.xlu1 %1194 }
 0x6c7   :  { %2136 = vrcp.f32 %v1195_v13 }
 0x6c9   :  { %v2133_v21 = vpop.eup %2132 }
 0x6ca   :  { %v1197_v41 = vpop.xlane.xlu1 %1196  ;;  %v1238_v22 = vmul.f32 %v2133_v21, %v2621_v32 }
 0x6cb   :  { %2138 = vrcp.f32 %v1197_v41 }
 0x6cd   :  { %v2135_v0 = vpop.eup %2134 }
 0x6ce   :  { %v1199_v27 = vpop.xlane.xlu1 %1198  ;;  %v1239_v26 = vmul.f32 %v2135_v0, %v2625_v17 }
 0x6cf   :  { %2140 = vrcp.f32 %v1199_v27 }
 0x6d0   :  { %v1254_v29 = vpack.c.bf16 %v1239_v26, %v1238_v22 }
 0x6d1   :  { %v2137_v47 = vpop.eup %2136 }
 0x6d2   :  { %1915 = vmatprep.mubr.bf16.mxu1 %v1254_v29  ;;  %v1201_v59 = vpop.xlane.xlu1 %1200  ;;  %v1240_v35 = vmul.f32 %v2137_v47, %v2629_v40 }
 0x6d3   :  { %2142 = vrcp.f32 %v1201_v59 }
 0x6d5   :  { %v2139_v57 = vpop.eup %2138 }
 0x6d6   :  { %v1241_v34 = vmul.f32 %v2139_v57, %v2633_v20  ;;  %v1203_v2 = vpop.xlane.xlu1 %1202 }
 0x6d7   :  { %2144 = vrcp.f32 %v1203_v2 }
 0x6d8   :  { %v1255_v10 = vpack.c.bf16 %v1241_v34, %v1240_v35 }
 0x6d9   :  { %v2141_v32 = vpop.eup %2140 }
 0x6da   :  { %v1205_v38 = vpop.xlane.xlu0 %1204  ;;  %1916 = vmatmul.mubr.bf16.vlgmr.msra.gmra.mrb[16].mxu1 %v1255_v10  ;;  %v1242_v15 = vmul.f32 %v2141_v32, %v2637_v43 }
 0x6db   :  { %2146 = vrcp.f32 %v1205_v38  ;;  %1952 = vmatpush3.bf16.msra.mxu1 %v2020_v30 }
 0x6dc   :  { %1953 = vmatprep.subr.bf16.mxu1 %v2169_v63 }
 0x6dd   :  { %v2143_v39 = vpop.eup %2142 }
 0x6de   :  { %v1207_v17 = vpop.xlane.xlu1 %1206  ;;  %v1243_v56 = vmul.f32 %v2143_v39, %v2641_v25 }
 0x6df   :  { %2148 = vrcp.f32 %v1207_v17  ;;  %1954 = vmatpush3.bf16.msra.mxu1 %v2021_v11 }
 0x6e0   :  { %v1256_v50 = vpack.c.bf16 %v1243_v56, %v1242_v15  ;;  %1955 = vmatprep.subr.bf16.mxu1 %v2169_v63 }
 0x6e1   :  { %v2145_v7 = vpop.eup %2144 }
 0x6e2   :  { %v1209_v44 = vpop.xlane.xlu0 %1208  ;;  %1919 = vmatprep.mubr.bf16.mxu1 %v1256_v50  ;;  %v1244_v60 = vmul.f32 %v2145_v7, %v2646_v48 }
 0x6e3   :  { %2150 = vrcp.f32 %v1209_v44 }
 0x6e5   :  { %v2147_v40 = vpop.eup %2146 }
 0x6e6   :  { %v1213_v20 = vpop.xlane.xlu0 %1212  ;;  %v1211_v45 = vpop.xlane.xlu1 %1210  ;;  %v1245_v61 = vmul.f32 %v2147_v40, %v2650_v55 }
 0x6e7   :  { %2152 = vrcp.f32 %v1213_v20 }
 0x6e8   :  { %2154 = vrcp.f32 %v1211_v45  ;;  %v1257_v5 = vpack.c.bf16 %v1245_v61, %v1244_v60 }
 0x6e9   :  { %v2149_v43 = vpop.eup %2148 }
 0x6ea   :  { %1920 = vmatmul.mubr.bf16.gmra.mrb[20].mxu1 %v1257_v5  ;;  %v1246_v31 = vmul.f32 %v2149_v43, %v2653_v53 }
 0x6ed   :  { %v2151_v24 = vpop.eup %2150 }
 0x6ee   :  { %v1215_v25 = vpop.xlane.xlu1 %1214  ;;  %v1247_v37 = vmul.f32 %v2151_v24, %v2658_v23 }
 0x6ef   :  { %2156 = vrcp.f32 %v1215_v25 }
 0x6f0   :  { %v1258_v4 = vpack.c.bf16 %v1247_v37, %v1246_v31 }
 0x6f1   :  { %v2153_v52 = vpop.eup %2152 }
 0x6f2   :  { %v2155_v3 = vpop.eup %2154  ;;  %v1217_v9 = vpop.xlane.xlu0 %1216  ;;  %1923 = vmatprep.mubr.bf16.mxu1 %v1258_v4  ;;  %v1249_v48 = vmul.f32 %v2153_v52, %v2662_v1 }
 0x6f3   :  { %v1219_v54 = vpop.xlane.xlu1 %1218  ;;  %2158 = vrcp.f32 %v1217_v9  ;;  %v1248_v55 = vmul.f32 %v2155_v3, %v2664_v8 }
 0x6f4   :  { %2160 = vrcp.f32 %v1219_v54 }
 0x6f5   :  { %v1259_v42 = vpack.c.bf16 %v1249_v48, %v1248_v55 }
 0x6f6   :  { %v1221_v46 = vpop.xlane.xlu0 %1220 }
 0x6f7   :  { %2162 = vrcp.f32 %v1221_v46  ;;  %1924 = vmatmul.mubr.bf16.gmra.mrb[24].mxu1 %v1259_v42 }
 0x6f9   :  { %v2157_v53 = vpop.eup %2156 }
 0x6fa   :  { %v1250_v23 = vmul.f32 %v2157_v53, %v2669_v6  ;;  %v2022_v6 = vld [vmem:[%s2791_s3 + $0x90] sm:$0xff]  }
 0x6fb   :  { %1956 = vmatpush3.bf16.msra.mxu1 %v2022_v6  ;;  %v1379_v6 = vld [vmem:[%s2795_s2] sm:$0xf] }
 0x6fc   :  { %1957 = vmatprep.subr.bf16.mxu1 %v2169_v63 }
 0x6fd   :  { %v2159_v16 = vpop.eup %2158 }
 0x6fe   :  { %v1251_v49 = vmul.f32 %v2159_v16, %v2674_v14  ;;  %v2161_v19 = vpop.eup %2160  ;;  %v2024_v14 = vld [vmem:[%s2791_s3 + $0xa0] sm:$0xff]  }
 0x6ff   :  { %v1252_v1 = vmul.f32 %v2161_v19, %v2672_v12  ;;  %v2023_v12 = vld [vmem:[%s2791_s3 + $0x98] sm:$0xff]  }
 0x700   :  { %v1260_v62 = vpack.c.bf16 %v1251_v49, %v1250_v23  ;;  %1958 = vmatpush3.bf16.msra.mxu1 %v2023_v12  ;;  %v2027_v12 = vld [vmem:[%s2791_s3 + $0xb8] sm:$0xff]  }
 0x701   :  { %v2163_v33 = vpop.eup %2162  ;;  %1959 = vmatprep.subr.bf16.mxu1 %v2169_v63 }
 0x702   :  { %1927 = vmatprep.mubr.bf16.mxu1 %v1260_v62  ;;  %v1253_v58 = vmul.f32 %v2163_v33, %v2678_v18  ;;  %v2025_v18 = vld [vmem:[%s2791_s3 + $0xa8] sm:$0xff]  }
 0x704   :  { %v1261_v8 = vpack.c.bf16 %v1253_v58, %v1252_v1  ;;  %1960 = vmatpush3.bf16.msra.mxu1 %v2024_v14  ;;  %v2028_v14 = vld [vmem:[%s2791_s3 + $0xc0] sm:$0xff]  }
 0x705   :  { %1961 = vmatprep.subr.bf16.mxu1 %v2169_v63 }
 0x706   :  { %1928 = vmatmul.mubr.bf16.gmra.mrb[28].mxu1 %v1261_v8 }
 0x707   :  { %1967 = vmatprep.mubr.msk.bf16.mxu1 %vm2170_vm0, %v2169_v63 }
 0x708   :  { %1962 = vmatpush3.bf16.msra.mxu1 %v2025_v18  ;;  %v2029_v18 = vld [vmem:[%s2791_s3 + $0xc8] sm:$0xff]  }
 0x709   :  { %1963 = vmatprep.subr.bf16.mxu1 %v2169_v63 }
 0x70c   :  { %1964 = vmatpush3.bf16.msra.mxu1 %v2026_v28  ;;  %v2030_v28 = vld [vmem:[%s2791_s3 + $0xd0] sm:$0xff]  }
 0x70d   :  { %1965 = vmatprep.subr.bf16.mxu1 %v2169_v63 }
 0x710   :  { %1966 = vmatpush3.bf16.msra.mxu1 %v2027_v12 }
 0x7ad   :  { %v1917_v13 = vpop.f32.mrb[16].mxu1 }
 0x7ae   :  { %v1309_v41 = vadd.f32 %v1917_v13, %v1693_v36  ;;  %v1300_v21 = vpop.f32.mrb[17].mxu1  ;;  %v2032_v13 = vld [vmem:[%s2791_s3 + $0xe0] sm:$0xff]  }
 0x7af   :  { %v1301_v0 = vadd.f32 %v1693_v36, %v1300_v21  ;;  %v1918_v27 = vpop.f32.mrb[18].mxu1 }
 0x7b0   :  { %v1312_v22 = vadd.f32 %v1918_v27, %v1693_v36  ;;  %v1303_v26 = vpop.f32.mrb[19].mxu1  ;;  %v1365_v59 = vmax.f32 %v1309_v41, 0.0  ;;  %v2033_v41 = vld [vmem:[%s2791_s3 + $0xe8] sm:$0xff]  }
 0x7b1   :  { %v1304_v29 = vadd.f32 %v1693_v36, %v1303_v26  ;;  %v1363_v57 = vmax.f32 %v1301_v0, 0.0 }
 0x7b2   :  { %v1366_v47 = vmax.f32 %v1312_v22, 0.0 }
 0x7b3   :  { %v1364_v35 = vmax.f32 %v1304_v29, 0.0  ;;  %v2034_v29 = vld [vmem:[%s2791_s3 + $0xf0] sm:$0xff]  }
 0x7b4   :  { %v1381_v34 = vpack.c.bf16 %v1366_v47, %v1365_v59  ;;  %v2035_v59 = vld [vmem:[%s2791_s3 + $0xf8] sm:$0xff]   ;;  %v1694_v47 = vld [vmem:[%s2794_s4 + $0x2] ss:$0 sm:$0xff] }
 0x7b5   :  { %v1380_v2 = vpack.c.bf16 %v1364_v35, %v1363_v57 }
 0x7b7   :  { %1932 = vmatpush3.bf16.msra.mxu0 %v1380_v2 }
 0x7b8   :  { %1933 = vmatprep.subr.bf16.mxu0 %v2169_v63 }
 0x7bb   :  { %1934 = vmatpush3.bf16.msra.mxu0 %v1381_v34 }
 0x7bc   :  { %1935 = vmatprep.subr.bf16.mxu0 %v2169_v63 }
 0x7bd   :  { %v1921_v10 = vpop.f32.mrb[20].mxu1 }
 0x7be   :  { %v1325_v38 = vadd.f32 %v1921_v10, %v1693_v36  ;;  %v1316_v32 = vpop.f32.mrb[21].mxu1 }
 0x7bf   :  { %v1317_v39 = vadd.f32 %v1693_v36, %v1316_v32  ;;  %v1922_v17 = vpop.f32.mrb[22].mxu1 }
 0x7c0   :  { %v1328_v15 = vadd.f32 %v1922_v17, %v1693_v36  ;;  %v1319_v56 = vpop.f32.mrb[23].mxu1  ;;  %v1369_v44 = vmax.f32 %v1325_v38, 0.0  ;;  %v1703_v17 = vld [vmem:[%s2794_s4 + $0x3] ss:$0 sm:$0xff] }
 0x7c1   :  { %v1320_v50 = vadd.f32 %v1693_v36, %v1319_v56  ;;  %v1367_v40 = vmax.f32 %v1317_v39, 0.0  ;;  %v1650_v39 = vand.u32 127, %v383_v51 }
 0x7c2   :  { %v1370_v7 = vmax.f32 %v1328_v15, 0.0 }
 0x7c3   :  { %v1368_v20 = vmax.f32 %v1320_v50, 0.0  ;;  %vm1651_vm1 = vcmp.lt.s32.totalorder %v1650_v39, 2 }
 0x7c4   :  { %v1383_v45 = vpack.c.bf16 %v1370_v7, %v1369_v44 }
 0x7c5   :  { %v1382_v60 = vpack.c.bf16 %v1368_v20, %v1367_v40 }
 0x7c7   :  { %1936 = vmatpush3.bf16.msra.mxu0 %v1382_v60 }
 0x7c8   :  { %1937 = vmatprep.subr.bf16.mxu0 %v2169_v63 }
 0x7ca   :  { %v1925_v61 = vpop.f32.mrb[24].mxu1 }
 0x7cb   :  { %v1341_v5 = vadd.f32 %v1925_v61, %v1693_v36  ;;  %v1332_v43 = vpop.f32.mrb[25].mxu1  ;;  %1938 = vmatpush3.bf16.msra.mxu0 %v1383_v45 }
 0x7cc   :  { %v1333_v24 = vadd.f32 %v1693_v36, %v1332_v43  ;;  %v1926_v25 = vpop.f32.mrb[26].mxu1  ;;  %1939 = vmatprep.subr.bf16.mxu0 %v2169_v63 }
 0x7cd   :  { %v1344_v31 = vadd.f32 %v1926_v25, %v1693_v36  ;;  %v1335_v37 = vpop.f32.mrb[27].mxu1  ;;  %v1373_v52 = vmax.f32 %v1341_v5, 0.0 }
 0x7ce   :  { %v1336_v4 = vadd.f32 %v1693_v36, %v1335_v37  ;;  %v1371_v9 = vmax.f32 %v1333_v24, 0.0 }
 0x7cf   :  { %v1374_v3 = vmax.f32 %v1344_v31, 0.0 }
 0x7d0   :  { %v1372_v54 = vmax.f32 %v1336_v4, 0.0 }
 0x7d1   :  { %v1385_v48 = vpack.c.bf16 %v1374_v3, %v1373_v52 }
 0x7d2   :  { %v1384_v55 = vpack.c.bf16 %v1372_v54, %v1371_v9 }
 0x7d4   :  { %1940 = vmatpush3.bf16.msra.mxu0 %v1384_v55 }
 0x7d5   :  { %1941 = vmatprep.subr.bf16.mxu0 %v2169_v63 }
 0x7d8   :  { %1942 = vmatpush3.bf16.msra.mxu0 %v1385_v48 }
 0x7d9   :  { %v1929_v42 = vpop.f32.mrb[28].mxu1  ;;  %1943 = vmatprep.subr.bf16.mxu0 %v2169_v63 }
 0x7da   :  { %v1357_v46 = vadd.f32 %v1929_v42, %v1693_v36  ;;  %v1348_v53 = vpop.f32.mrb[29].mxu1 }
 0x7db   :  { %v1349_v16 = vadd.f32 %v1693_v36, %v1348_v53  ;;  %v1930_v23 = vpop.f32.mrb[30].mxu1 }
 0x7dc   :  { %v1360_v49 = vadd.f32 %v1930_v23, %v1693_v36  ;;  %v1351_v19 = vpop.f32.mrb[31].mxu1  ;;  %v1377_v33 = vmax.f32 %v1357_v46, 0.0 }
 0x7dd   :  { %v1352_v62 = vadd.f32 %v1693_v36, %v1351_v19  ;;  %v1375_v58 = vmax.f32 %v1349_v16, 0.0  ;;  %v2031_v36 = vld [vmem:[%s2791_s3 + $0xd8] sm:$0xff]  }
 0x7de   :  { %v1378_v1 = vmax.f32 %v1360_v49, 0.0 }
 0x7df   :  { %v1376_v8 = vmax.f32 %v1352_v62, 0.0 }
 0x7e0   :  { %v1387_v30 = vpack.c.bf16 %v1378_v1, %v1377_v33 }
 0x7e1   :  { %v1386_v11 = vpack.c.bf16 %v1376_v8, %v1375_v58 }
 0x7e3   :  { %1944 = vmatpush3.bf16.msra.mxu0 %v1386_v11 }
 0x7e4   :  { %1945 = vmatprep.subr.bf16.mxu0 %v2169_v63 }
 0x7e7   :  { %1946 = vmatpush3.bf16.msra.mxu0 %v1387_v30 }
 0x7e8   :  { %1971 = vmatprep.subr.bf16.mxu0 %v2169_v63 }
 0x7ea   :  { %1948 = vmatmul.mubr.bf16.vlgmr.msra.gmra.mrb[32].mxu0 %v1379_v6 }
 0x7eb   :  { %1987 = vmatprep.mubr.msk.bf16.mxu0 %vm2170_vm0, %v2169_v63  ;;  %1972 = vmatpush3.bf16.msra.mxu0 %v2028_v14 }
 0x7ec   :  { %1973 = vmatprep.subr.bf16.mxu0 %v2169_v63 }
 0x7ef   :  { %1974 = vmatpush3.bf16.msra.mxu0 %v2029_v18 }
 0x7f0   :  { %1975 = vmatprep.subr.bf16.mxu0 %v2169_v63 }
 0x7f3   :  { %1976 = vmatpush3.bf16.msra.mxu0 %v2030_v28 }
 0x7f4   :  { %1977 = vmatprep.subr.bf16.mxu0 %v2169_v63 }
 0x7f7   :  { %1978 = vmatpush3.bf16.msra.mxu0 %v2031_v36 }
 0x7f8   :  { %1979 = vmatprep.subr.bf16.mxu0 %v2169_v63 }
 0x7fb   :  { %1980 = vmatpush3.bf16.msra.mxu0 %v2032_v13 }
 0x7fc   :  { %1981 = vmatprep.subr.bf16.mxu0 %v2169_v63 }
 0x7ff   :  { %1982 = vmatpush3.bf16.msra.mxu0 %v2033_v41 }
 0x800   :  { %1983 = vmatprep.subr.bf16.mxu0 %v2169_v63 }
 0x803   :  { %1984 = vmatpush3.bf16.msra.mxu0 %v2034_v29 }
 0x804   :  { %1985 = vmatprep.subr.bf16.mxu0 %v2169_v63 }
 0x807   :  { %1986 = vmatpush3.bf16.msra.mxu0 %v2035_v59 }
 0x8bd   :  { %v1422_v21 = vpop.f32.mrb[32].mxu0 }
 0x8be   :  { %v1428_v0 = vpack.c.bf16 %v1422_v21, %v1422_v21  ;;  %v1949_v27 = vpop.f32.mrb[33].mxu0 }
 0x8bf   :  { %v1425_v22 = vpop.f32.mrb[34].mxu0 }
 0x8c0   :  { %v1950_v26 = vpop.f32.mrb[35].mxu0  ;;  %1968 = vmatmul.mubr.bf16.vlgmr.msra.gmra.mrb[32].mxu1 %v1428_v0 }
 0x993   :  { %v1532_v57 = vpop.f32.mrb[32].mxu1 }
 0x994   :  { %v1533_v35 = vadd.f32 %v1694_v47, %v1532_v57  ;;  %v1969_v34 = vpop.f32.mrb[33].mxu1 }
 0x995   :  { %v1535_v2 = vpop.f32.mrb[34].mxu1 }
 0x996   :  { %v1538_v10 = vmax.f32 %v1533_v35, 0.0  ;;  %v1970_v38 = vpop.f32.mrb[35].mxu1 }
 0x998   :  { %v1539_v32 = vpack.c.bf16 %v1538_v10, %v1538_v10 }
 0x99a   :  { %1988 = vmatmul.mubr.bf16.vlgmr.msra.gmra.mrb[36].mxu0 %v1539_v32 }
 0xa6d   :  { %v1643_v63 = vpop.f32.mrb[36].mxu0 }
 0xa6e   :  { %v1644_v15 = vadd.f32 %v1703_v17, %v1643_v63  ;;  %v1989_v56 = vpop.f32.mrb[37].mxu0 }
 0xa6f   :  { %v1646_v50 = vpop.f32.mrb[38].mxu0 }
 0xa70   :  { %v1990_v44 = vpop.f32.mrb[39].mxu0  ;;  %v1652_v7 = vsel %vm1651_vm1, %v1644_v15, -1e+30 }
 0xa71   :  { %1653 = vmax.xlane.f32.xlu1 %v1652_v7 }
 0xafe   :  { %v1654_v40 = vpop.xlane.xlu1 %1653 }
 0xaff   :  { %v1655_v20 = vsub.f32 %v1652_v7, %v1654_v40 }
 0xb01   :  { %v1656_v45 = vmul.f32 1.442695, %v1655_v20 }
 0xb03   :  { %2164 = vpow2.f32 %v1656_v45 }
 0xb0d   :  { %v2165_v60 = vpop.eup %2164 }
 0xb0e   :  { %1658 = vadd.xlane.f32.xlu0 %v2165_v60 }
 0xb9b   :  { %v1659_v61 = vpop.xlane.xlu0 %1658 }
 0xb9c   :  { %2166 = vlog2.f32 %v1659_v61 }
 0xba6   :  { %v2167_v51 = vpop.eup %2166 }
 0xba7   :  { %v1661_v5 = vmul.f32 0.6931472, %v2167_v51 }
 0xba9   :  { %v1662_v43 = vsub.f32 %v1655_v20, %v1661_v5 }
 0xbab   :  { %1663 = vst [vmem:[%s2796_s5] sm:$0xff] %v1662_v43 }

</bundles_post_ra>
